<compile_context>
chip_gen: v5e
topology: v5e:2x2
jax: 0.10.0
libtpu: 0.0.40
codegen_flags: <defaults>
</compile_context>

<pallas_src>
import functools

import jax
import jax.numpy as jnp
from jax import lax
from jax.experimental import pallas as pl
from jax.experimental.pallas import tpu as pltpu

VOCAB = 39972 + 1
PAD_IDX = 39972


def _round_up(x, m):
    return ((x + m - 1) // m) * m


def _vmem_capacity_bytes():
    """Best-effort physical VMEM query; conservative (v7x) default on failure."""
    try:
        info = pltpu.get_tpu_info()
        cap = getattr(info, "vmem_capacity_bytes", None)
        if cap:
            return int(cap)
    except Exception:
        pass
    return 64 << 20  # v7x per-TensorCore VMEM (smallest of the targets)


# ---------------------------------------------------------------------------
# Kernel 1: one-shot fusion  fused[v, :] = relu(table[v, :] @ W + b)
# Runs once per parameter set, not per token.
# ---------------------------------------------------------------------------
def _fuse_table_kernel(tab_ref, w_ref, b_ref, out_ref):
    acc = jnp.dot(tab_ref[...], w_ref[...], preferred_element_type=jnp.float32)
    out_ref[...] = jnp.maximum(acc + b_ref[...], 0.0).astype(out_ref.dtype)


def fuse_embedding_linear_relu(table, w, b):
    """table: (VOCAB, 2h) f32, w: (2h, h) f32, b: (h,) f32 -> (VOCAB_pad, H_pad) f32.

    Output hidden dim is zero-padded to a multiple of 128 (lane-dense rows)."""
    vocab, h2 = table.shape
    _, h = w.shape
    h_pad = _round_up(h, 128)

    # Largest vocab tile whose double-buffered tiles + weights fit ~24 MiB
    # (safe under v7x's 64 MiB physical / raised scoped limit; v5e/v6e trivially).
    def tile_bytes(t):
        return 2 * t * (h2 + h_pad) * 4 + h2 * h_pad * 4 + h_pad * 4

    tr = 2048
    while tr > 256 and tile_bytes(tr) > (24 << 20):
        tr //= 2

    vocab_pad = _round_up(vocab, tr)
    table_pad = jnp.pad(table, ((0, vocab_pad - vocab), (0, 0)))
    w_pad = jnp.pad(w, ((0, 0), (0, h_pad - h)))                 # padded cols -> 0
    b_pad = jnp.pad(b, (0, h_pad - h)).reshape(1, h_pad)          # padded cols -> 0

    fused = pl.pallas_call(
        _fuse_table_kernel,
        out_shape=jax.ShapeDtypeStruct((vocab_pad, h_pad), jnp.float32),
        grid=(vocab_pad // tr,),
        in_specs=[
            pl.BlockSpec((tr, h2), lambda i: (i, 0)),     # table tile
            pl.BlockSpec((h2, h_pad), lambda i: (0, 0)),  # weight, resident
            pl.BlockSpec((1, h_pad), lambda i: (0, 0)),   # bias, resident
        ],
        out_specs=pl.BlockSpec((tr, h_pad), lambda i: (i, 0)),
        compiler_params=pltpu.CompilerParams(
            dimension_semantics=("parallel",),
            vmem_limit_bytes=tile_bytes(tr) + (4 << 20)),
    )(table_pad, w_pad, b_pad)
    return fused


# ---------------------------------------------------------------------------
# Kernel 2a: gather from a VMEM-resident fused table (no per-row DMAs).
# Requires "arbitrary" grid semantics so the table scratch persists across steps.
# ---------------------------------------------------------------------------
def _gather_vmem_kernel(ids_ref,     # SMEM (scalar prefetch): (N_pad,) int32 ids
                        fused_hbm,   # ANY/HBM: (VOCAB_pad, H_pad) f32 fused table
                        out_ref,     # VMEM out tile: (TN, H_pad) f32
                        tbl_vmem,    # VMEM scratch: (VOCAB_pad, H_pad) f32
                        sem,         # DMA sem (1,)
                        *, tn):
    step = pl.program_id(0)

    @pl.when(step == 0)
    def _():
        # One-shot, whole-table HBM -> VMEM copy; persists for all later steps.
        cp = pltpu.make_async_copy(fused_hbm, tbl_vmem, sem.at[0])
        cp.start()
        cp.wait()

    base = step * tn

    def body(i, carry):
        # Gather 8 rows with dynamic vector loads, store one aligned (8, H) block.
        t0 = pl.multiple_of(i * 8, 8)
        rows = [tbl_vmem[pl.ds(ids_ref[base + t0 + j], 1), :] for j in range(8)]
        out_ref[pl.ds(t0, 8), :] = jnp.concatenate(rows, axis=0)
        return carry

    lax.fori_loop(0, tn // 8, body, 0, unroll=min(4, tn // 8))


# ---------------------------------------------------------------------------
# Kernel 2b: HBM DMA gather fallback (rows DMA'd directly into out_ref,
# single aggregated wait).
# ---------------------------------------------------------------------------
def _gather_hbm_kernel(ids_ref,     # SMEM (scalar prefetch): (N_pad,) int32 ids
                       fused_hbm,   # ANY/HBM: (VOCAB_pad, H_pad) f32 fused table
                       out_ref,     # VMEM out tile: (TN, H_pad) f32
                       sem,         # DMA sem (1,) shared by all row copies
                       *, tn):
    base = pl.program_id(0) * tn

    # Issue every row DMA of this tile first (all SMEM id reads before any wait;
    # up to `tn` copies in flight).  Destination is the output tile directly.
    def issue(t, carry):
        row = ids_ref[base + t]
        pltpu.make_async_copy(fused_hbm.at[row], out_ref.at[t], sem.at[0]).start()
        return carry

    lax.fori_loop(0, tn, issue, 0, unroll=min(8, tn))

    # ONE aggregated wait: the DMA semaphore counts bytes, and tn issued copies
    # of H_pad*4 bytes each sum to exactly this descriptor's tn*H_pad*4 bytes.
    # (Invariant: every issued copy is a single full-width row; keep in sync.)
    pltpu.make_async_copy(fused_hbm.at[pl.ds(0, tn)], out_ref, sem.at[0]).wait()


def pharmacophore_encoder(pcp_batch, pcp_masks, fused_table, h, *, tn=1024,
                          min_tokens_for_resident_table=4096):
    """pcp_batch: (B, L) int ids; fused_table: (VOCAB_pad, H_pad) f32 from kernel 1."""
    B, L = pcp_batch.shape
    vocab_pad, h_pad = fused_table.shape
    N = B * L
    tn = max(8, min(tn, _round_up(N, 8)))       # big tiles, clamped for tiny inputs
    n_pad = _round_up(N, tn)

    ids = pcp_batch.reshape(-1).astype(jnp.int32)
    # Clamp ids: an out-of-range id would drive an OOB HBM DMA (hardware fault,
    # not a clean error).  Clamping maps invalid ids to PAD_IDX (padding output);
    # PyTorch would raise instead -- documented behavioural difference.
    ids = jnp.clip(ids, 0, VOCAB - 1)
    ids = jnp.pad(ids, (0, n_pad - N), constant_values=PAD_IDX)

    grid = (n_pad // tn,)
    table_bytes = vocab_pad * h_pad * 4
    out_buf_bytes = 2 * tn * h_pad * 4          # double-buffered out tiles

    use_resident_table = (
        N >= min_tokens_for_resident_table
        and table_bytes + out_buf_bytes + (4 << 20) <= int(0.75 * _vmem_capacity_bytes())
    )

    def call_vmem_path():
        kernel = functools.partial(_gather_vmem_kernel, tn=tn)
        out = pl.pallas_call(
            kernel,
            out_shape=jax.ShapeDtypeStruct((n_pad, h_pad), jnp.float32),
            grid_spec=pltpu.PrefetchScalarGridSpec(
                num_scalar_prefetch=1,
                grid=grid,
                in_specs=[pl.BlockSpec(memory_space=pl.ANY)],   # table stays in HBM
                out_specs=pl.BlockSpec((tn, h_pad), lambda i, _ids: (i, 0)),
                scratch_shapes=[
                    pltpu.VMEM((vocab_pad, h_pad), jnp.float32),
                    pltpu.SemaphoreType.DMA((1,)),
                ],
            ),
            compiler_params=pltpu.CompilerParams(
                # "arbitrary": sequential grid so the step-0 table load is seen
                # by all later steps (scratch persists on a single TensorCore).
                dimension_semantics=("arbitrary",),
                vmem_limit_bytes=table_bytes + out_buf_bytes + (4 << 20)),
        )(ids, fused_table)
        return jax.block_until_ready(out)

    def call_hbm_path():
        kernel = functools.partial(_gather_hbm_kernel, tn=tn)
        return pl.pallas_call(
            kernel,
            out_shape=jax.ShapeDtypeStruct((n_pad, h_pad), jnp.float32),
            grid_spec=pltpu.PrefetchScalarGridSpec(
                num_scalar_prefetch=1,
                grid=grid,
                in_specs=[pl.BlockSpec(memory_space=pl.ANY)],   # table stays in HBM
                out_specs=pl.BlockSpec((tn, h_pad), lambda i, _ids: (i, 0)),
                scratch_shapes=[
                    pltpu.SemaphoreType.DMA((1,)),
                ],
            ),
            compiler_params=pltpu.CompilerParams(
                dimension_semantics=("parallel",)),   # tiles independent -> megacore
        )(ids, fused_table)

    out = None
    if use_resident_table:
        try:
            out = call_vmem_path()
        except Exception:
            out = None   # fall back to the (proven) HBM DMA-gather path
    if out is None:
        out = call_hbm_path()

    out = out[:N, :h].reshape(B, L, h)
    # TODO(synk): training-mode stochastic Dropout not implemented (eval semantics:
    # dropout is identity, which is what allows folding Linear+ReLU into the table).
    return out, pcp_masks


def init_params(h, key):
    """Deterministic synthetic parameters matching the module's __init__ shapes."""
    k_emb, k_w, k_b = jax.random.split(key, 3)
    table = jax.random.normal(k_emb, (VOCAB, 2 * h), dtype=jnp.float32) * 0.02
    table = table.at[PAD_IDX].set(0.0)                       # padding_idx row = zeros
    w = jax.random.normal(k_w, (2 * h, h), dtype=jnp.float32) * 0.05
    b = jax.random.normal(k_b, (h,), dtype=jnp.float32) * 0.01
    return table, w, b


def _reference(pcp_batch, table, w, b):
    return jnp.maximum(jnp.einsum("bld,dh->blh", table[pcp_batch], w) + b, 0.0)


if __name__ == "__main__":
    h = 32           # hidden size

    key = jax.random.PRNGKey(0)
    k_ids1, k_ids2, k_params = jax.random.split(key, 3)

    table, w, b = init_params(h, k_params)

    # One-shot fusion of Embedding weights + Linear + ReLU (kernel 1).
    fused = jax.block_until_ready(fuse_embedding_linear_relu(table, w, b))

    # Case 1: tiny batch (exercises the HBM DMA-gather path).
    B1, L1 = 2, 8
    pcp1 = jax.random.randint(k_ids1, (B1, L1), 0, VOCAB - 1, dtype=jnp.int32)
    pcp1 = pcp1.at[:, -2:].set(PAD_IDX)          # exercise padding_idx
    masks1 = (pcp1 != PAD_IDX).astype(jnp.float32)
    out1, masks1_out = pharmacophore_encoder(pcp1, masks1, fused, h)
    out1 = jax.block_until_ready(out1)
    ref1 = _reference(pcp1, table, w, b)
    assert out1.shape == (B1, L1, h)
    assert jnp.allclose(out1, ref1, rtol=1e-3, atol=1e-3), "small-case mismatch"
    assert jnp.array_equal(masks1_out, masks1)

    # Case 2: enough tokens to exercise the VMEM-resident-table gather path.
    B2, L2 = 8, 640
    pcp2 = jax.random.randint(k_ids2, (B2, L2), 0, VOCAB - 1, dtype=jnp.int32)
    pcp2 = pcp2.at[:, -16:].set(PAD_IDX)
    masks2 = (pcp2 != PAD_IDX).astype(jnp.float32)
    out2, _ = pharmacophore_encoder(pcp2, masks2, fused, h)
    out2 = jax.block_until_ready(out2)
    ref2 = _reference(pcp2, table, w, b)
    assert out2.shape == (B2, L2, h)
    assert jnp.allclose(out2, ref2, rtol=1e-3, atol=1e-3), "large-case mismatch"

    print("KERNEL_OK")
</pallas_src>

<mosaic_0001>
module attributes {stable_mosaic.version = 11 : i64} {
  func.func @_fuse_table_kernel(%arg0: i32, %arg1: memref<2048x64xf32, #tpu.memory_space<vmem>>, %arg2: memref<64x128xf32, #tpu.memory_space<vmem>>, %arg3: memref<1x128xf32, #tpu.memory_space<vmem>>, %arg4: memref<2048x128xf32, #tpu.memory_space<vmem>>) attributes {dimension_semantics = [#tpu.dimension_semantics<parallel>], iteration_bounds = array<i64: 20>, scalar_prefetch = 0 : i64, scratch_operands = 0 : i64, tpu.core_type = #tpu.core_type<tc>, window_params = [{transform_indices = @transform_0, window_bounds = array<i64: 2048, 64>}, {pipeline_mode = #tpu.pipeline_mode<synchronous>, transform_indices = @transform_1, window_bounds = array<i64: 64, 128>}, {pipeline_mode = #tpu.pipeline_mode<synchronous>, transform_indices = @transform_2, window_bounds = array<i64: 1, 128>}, {transform_indices = @transform_3, window_bounds = array<i64: 2048, 128>}]} {
    %c0 = arith.constant 0 : index
    %c0_0 = arith.constant 0 : index
    %0 = vector.load %arg1[%c0, %c0_0] : memref<2048x64xf32, #tpu.memory_space<vmem>>, vector<2048x64xf32>
    %c0_1 = arith.constant 0 : index
    %c0_2 = arith.constant 0 : index
    %1 = vector.load %arg2[%c0_1, %c0_2] : memref<64x128xf32, #tpu.memory_space<vmem>>, vector<64x128xf32>
    %cst = arith.constant dense<0.000000e+00> : vector<2048x128xf32>
    %2 = tpu.matmul %0, %1, %cst {dimension_numbers = #tpu.dot_dimension_numbers<[1], [0], [0], [1], [0, 0, 1, 1], [], []>} : vector<2048x64xf32>, vector<64x128xf32>, vector<2048x128xf32> -> vector<2048x128xf32>
    %c0_3 = arith.constant 0 : index
    %c0_4 = arith.constant 0 : index
    %3 = vector.load %arg3[%c0_3, %c0_4] : memref<1x128xf32, #tpu.memory_space<vmem>>, vector<1x128xf32>
    %4 = vector.broadcast %3 : vector<1x128xf32> to vector<2048x128xf32>
    %5 = arith.addf %2, %4 : vector<2048x128xf32>
    %cst_5 = arith.constant 0.000000e+00 : f32
    %6 = vector.broadcast %cst_5 : f32 to vector<2048x128xf32>
    %7 = arith.maximumf %5, %6 : vector<2048x128xf32>
    %c0_6 = arith.constant 0 : index
    %c0_7 = arith.constant 0 : index
    %8 = vector.load %arg4[%c0_6, %c0_7] : memref<2048x128xf32, #tpu.memory_space<vmem>>, vector<2048x128xf32>
    tpu.vector_store %arg4[%c0_6, %c0_7], %7 {strides = array<i32>} : memref<2048x128xf32, #tpu.memory_space<vmem>>, vector<2048x128xf32>,
    return
  }
  func.func @transform_0(%arg0: i32) -> (i32, i32) {
    %c0_i32 = arith.constant 0 : i32
    %c0_i32_0 = arith.constant 0 : i32
    return %arg0, %c0_i32 : i32, i32
  }
  func.func @transform_1(%arg0: i32) -> (i32, i32) {
    %c0_i32 = arith.constant 0 : i32
    %c0_i32_0 = arith.constant 0 : i32
    %c0_i32_1 = arith.constant 0 : i32
    return %c0_i32, %c0_i32_0 : i32, i32
  }
  func.func @transform_2(%arg0: i32) -> (i32, i32) {
    %c0_i32 = arith.constant 0 : i32
    %c0_i32_0 = arith.constant 0 : i32
    %c0_i32_1 = arith.constant 0 : i32
    return %c0_i32, %c0_i32_0 : i32, i32
  }
  func.func @transform_3(%arg0: i32) -> (i32, i32) {
    %c0_i32 = arith.constant 0 : i32
    %c0_i32_0 = arith.constant 0 : i32
    return %arg0, %c0_i32 : i32, i32
  }
}

</mosaic_0001>

<bundles_post_ra>
// kernel: tpu_custom_call.1
= control target key start
LH: loop header
LB: loop body
LE: loop exit
PB: predicated region body
PF: predicated region fallthrough
CT: control target
= control target key end

     0   :  { %8 = vsyncpa [#allocation3], 0  ;;  %s4163_s0 = inlined_call_operand.vmem [shape: f32[40960,64], index: 0, kind: input, shape index: {}]   ;;  %s4164_s1 = inlined_call_operand.vmem [shape: f32[64,128], index: 1, kind: input, shape index: {}]   ;;  %s4165_s2 = inlined_call_operand.vmem [shape: f32[1,128], index: 2, kind: input, shape index: {}]   ;;  %s4166_s3 = inlined_call_operand.hbm [shape: f32[40960,128], index: 3, kind: output, shape index: {}]  }
   0x1   :  { %10 = vsyncpa [#allocation3 + $0x1], 0  ;;  %s3007_s12 = smov 0   ;;  %s3009_s13 = smov 0  }
   0x2   :  { %s3011_s14 = smov 0   ;;  %s3013_s15 = smov 0  }
   0x3 LB: > { %s3028_s16 = sadd.s32 4294967295, %s2983_s15   ;;  %s2584_s17 = sadd.s32 4294967294, %s2983_s15   ;;  %s2983_s15 = sphi %s3013_s15, %s4172_s15   ;;  %s2979_s14 = sphi %s3011_s14, %s4171_s14   ;;  %s2975_s13 = sphi %s3009_s13, %s4170_s13   ;;  %s2971_s12 = sphi %s3007_s12, %s4169_s12  }
   0x4   : > { %s3032_s18 = sadd.s32 1, %s2983_s15   ;;  %s91_s19 = sadd.s32 1, %s2979_s14 }
   0x5   : > { %s88_s20 = ssub.s32 %s2983_s15, %s3032_s18  ;;  %p101_p0 = scmp.ne.s32.totalorder %s2979_s14, %s2975_s13 }
   0x6   : > { %p89_p1 = scmp.eq.s32.totalorder %s88_s20, 0  ;;  %p102_p2 = scmp.eq.s32.totalorder %s3028_s16, 19 }
   0x7   : > { %p107_p3 = scmp.ne.s32.totalorder %s2975_s13, %s2971_s12  ;;  %p108_p4 = scmp.eq.s32.totalorder %s2584_s17, 19 }
   0x8   : > { %s3043_s21 = scalar_select %p89_p1, %s2979_s14, %s91_s19  }
   0x9   : > { %p3045_p5 = por %p102_p2, %p101_p0  ;;  %p3049_p6 = por %p108_p4, %p107_p3 }
   0xa   : > { %p2587_p7 = scmp.ge.s32.totalorder %s2983_s15, 1  ;;  %p141_p8 = scmp.lt.s32.totalorder %s2983_s15, 21 }
   0xc   : > { %p142_p9 = pnand %p2587_p7, %p141_p8 }
   0xd   : > { %s2589_s28 = sshll.u32 (!%p142_p9), %s3028_s16, 8  ;;  %s162_s27 = sand.u32 (!%p142_p9), 1, %s2975_s13  }
   0xe   : > { %145 = sbr.rel (%p142_p9) target bundleno = 680 (0x2a8), region = 32  ;;  %p166_p10 = scmp.lt.s32.totalorder (!%p142_p9), %s2589_s28, 5119 }
   0xf   : > { %s2588_s30 = sshll.u32 (!%p142_p9), %s162_s27, 11  ;;  %s2852_s9 = sshll.u32 (!%p142_p9), %s3028_s16, 11 }
  0x10   : > { %s3231_s4 = scalar_lea.vmem (!%p142_p9), [#allocation2], %s2588_s30  ;;  %s2518_s17 = scalar_lea.hbm (!%p142_p9), %s4166_s3, %s2852_s9 }
  0x11   : > { %s2519_s16 = sshll.u32 (!%p142_p9), %s3231_s4, 4  ;;  %s2521_s19 = sshll.u32 (!%p142_p9), %s2518_s17, 4  ;;  %s2520_s16 = int_to_ptr.vmem [resolvable:$true] %s2519_s16  ;;  %s2522_s19 = int_to_ptr.hbm [resolvable:$true] %s2521_s19 }
  0x12   : > { %s2507_s20 = scalar_lea.sflag (!%p142_p9), [#allocation3], %s162_s27  ;;  %s2941_s29 = scalar_lea.hbm (!%p142_p9), %s4166_s3, 40960 }
  0x13   : > { %v435_v0 = vld [vmem:[%s4164_s1 + $0x38] sm:$0xff]  ;;  %v434_v1 = vld [vmem:[%s4164_s1 + $0x30] sm:$0xff]  ;;  %v433_v2 = vld [vmem:[%s4164_s1 + $0x28] sm:$0xff]  ;;  %s4174_s28 = smov (!%p166_p10, %s2589_s28), 5119  ;;  %vm440_vm0 = vcmask 523264  }
  0x14   : > { %2854 = vmatpush.msra.mxu2 %v435_v0  ;;  %2855 = vmatpush.msra.mxu3 %v435_v0  ;;  %v432_v3 = vld [vmem:[%s4164_s1 + $0x20] sm:$0xff]  ;;  %v431_v4 = vld [vmem:[%s4164_s1 + $0x18] sm:$0xff]  ;;  %s2590_s8 = sshll.u32 %s4174_s28, 3  ;;  %v430_v5 = vld [vmem:[%s4164_s1 + $0x10] sm:$0xff] }
  0x15   : > { %1217 = vmatpush.msra.mxu0 %v435_v0  ;;  %2853 = vmatpush.msra.mxu1 %v435_v0  ;;  %v429_v6 = vld [vmem:[%s4164_s1 + $0x8] sm:$0xff]  ;;  %s3080_s24 = scalar_lea.vmem %s4163_s0, %s2590_s8  ;;  %v428_v7 = vld [vmem:[%s4164_s1] sm:$0xff] }
  0x16   : > { %2857 = vmatpush.msra.mxu2 %v434_v1  ;;  %2858 = vmatpush.msra.mxu3 %v434_v1  ;;  %v300_v8 = vld [vmem:[%s3080_s24 + $0x400] sm:$0xff]  ;;  %v301_v12 = vld [vmem:[%s3080_s24 + $0x408] sm:$0xff]  ;;  %v302_v16 = vld [vmem:[%s3080_s24 + $0x410] sm:$0xff] }
  0x17   : > { %1218 = vmatpush.msra.mxu0 %v434_v1  ;;  %2856 = vmatpush.msra.mxu1 %v434_v1  ;;  %v364_v9 = vld [vmem:[%s3080_s24 + $0x600] sm:$0xff]  ;;  %v365_v13 = vld [vmem:[%s3080_s24 + $0x608] sm:$0xff]  ;;  %v366_v17 = vld [vmem:[%s3080_s24 + $0x610] sm:$0xff] }
  0x18   : > { %2860 = vmatpush.msra.mxu2 %v433_v2  ;;  %2861 = vmatpush.msra.mxu3 %v433_v2  ;;  %v172_v10 = vld [vmem:[%s3080_s24] sm:$0xff]  ;;  %v173_v14 = vld [vmem:[%s3080_s24 + $0x8] sm:$0xff]  ;;  %v174_v18 = vld [vmem:[%s3080_s24 + $0x10] sm:$0xff] }
  0x19   : > { %1219 = vmatpush.msra.mxu0 %v433_v2  ;;  %2859 = vmatpush.msra.mxu1 %v433_v2  ;;  %v236_v11 = vld [vmem:[%s3080_s24 + $0x200] sm:$0xff]  ;;  %v237_v15 = vld [vmem:[%s3080_s24 + $0x208] sm:$0xff]  ;;  %v238_v19 = vld [vmem:[%s3080_s24 + $0x210] sm:$0xff] }
  0x1a   : > { %2863 = vmatpush.msra.mxu2 %v432_v3  ;;  %2864 = vmatpush.msra.mxu3 %v432_v3  ;;  %v303_v20 = vld [vmem:[%s3080_s24 + $0x418] sm:$0xff]  ;;  %v304_v24 = vld [vmem:[%s3080_s24 + $0x420] sm:$0xff]  ;;  %v305_v28 = vld [vmem:[%s3080_s24 + $0x428] sm:$0xff] }
  0x1b   : > { %1220 = vmatpush.msra.mxu0 %v432_v3  ;;  %2862 = vmatpush.msra.mxu1 %v432_v3  ;;  %v367_v21 = vld [vmem:[%s3080_s24 + $0x618] sm:$0xff]  ;;  %v368_v25 = vld [vmem:[%s3080_s24 + $0x620] sm:$0xff]  ;;  %v369_v29 = vld [vmem:[%s3080_s24 + $0x628] sm:$0xff] }
  0x1c   : > { %2866 = vmatpush.msra.mxu2 %v431_v4  ;;  %2867 = vmatpush.msra.mxu3 %v431_v4  ;;  %v175_v22 = vld [vmem:[%s3080_s24 + $0x18] sm:$0xff]  ;;  %v176_v26 = vld [vmem:[%s3080_s24 + $0x20] sm:$0xff]  ;;  %v177_v30 = vld [vmem:[%s3080_s24 + $0x28] sm:$0xff] }
  0x1d   : > { %1221 = vmatpush.msra.mxu0 %v431_v4  ;;  %2865 = vmatpush.msra.mxu1 %v431_v4  ;;  %v239_v23 = vld [vmem:[%s3080_s24 + $0x218] sm:$0xff]  ;;  %v240_v27 = vld [vmem:[%s3080_s24 + $0x220] sm:$0xff]  ;;  %v241_v31 = vld [vmem:[%s3080_s24 + $0x228] sm:$0xff] }
  0x1e   : > { %2869 = vmatpush.msra.mxu2 %v430_v5  ;;  %2870 = vmatpush.msra.mxu3 %v430_v5  ;;  %v306_v32 = vld [vmem:[%s3080_s24 + $0x430] sm:$0xff]  ;;  %v307_v36 = vld [vmem:[%s3080_s24 + $0x438] sm:$0xff]  ;;  %v308_v40 = vld [vmem:[%s3080_s24 + $0x440] sm:$0xff] }
  0x1f   : > { %1222 = vmatpush.msra.mxu0 %v430_v5  ;;  %2868 = vmatpush.msra.mxu1 %v430_v5  ;;  %v370_v33 = vld [vmem:[%s3080_s24 + $0x630] sm:$0xff]  ;;  %v371_v37 = vld [vmem:[%s3080_s24 + $0x638] sm:$0xff]  ;;  %v372_v41 = vld [vmem:[%s3080_s24 + $0x640] sm:$0xff] }
  0x20   : > { %2872 = vmatpush.msra.mxu2 %v429_v6  ;;  %2873 = vmatpush.msra.mxu3 %v429_v6  ;;  %v178_v34 = vld [vmem:[%s3080_s24 + $0x30] sm:$0xff]  ;;  %v179_v38 = vld [vmem:[%s3080_s24 + $0x38] sm:$0xff]  ;;  %v180_v42 = vld [vmem:[%s3080_s24 + $0x40] sm:$0xff] }
  0x21   : > { %1223 = vmatpush.msra.mxu0 %v429_v6  ;;  %2871 = vmatpush.msra.mxu1 %v429_v6  ;;  %v242_v35 = vld [vmem:[%s3080_s24 + $0x230] sm:$0xff]  ;;  %v243_v39 = vld [vmem:[%s3080_s24 + $0x238] sm:$0xff]  ;;  %v244_v43 = vld [vmem:[%s3080_s24 + $0x240] sm:$0xff] }
  0x22   : > { %2875 = vmatpush.msra.mxu2 %v428_v7  ;;  %2876 = vmatpush.msra.mxu3 %v428_v7  ;;  %v309_v44 = vld [vmem:[%s3080_s24 + $0x448] sm:$0xff]  ;;  %v310_v48 = vld [vmem:[%s3080_s24 + $0x450] sm:$0xff]  ;;  %v311_v52 = vld [vmem:[%s3080_s24 + $0x458] sm:$0xff] }
  0x23   : > { %2719 = vmatmul.msk.f32.vlgmr.msra.gmra.mxu2 %vm440_vm0, %v300_v8  ;;  %2783 = vmatmul.msk.f32.vlgmr.msra.gmra.mxu3 %vm440_vm0, %v364_v9  ;;  %v373_v45 = vld [vmem:[%s3080_s24 + $0x648] sm:$0xff]  ;;  %v374_v49 = vld [vmem:[%s3080_s24 + $0x650] sm:$0xff]  ;;  %v375_v53 = vld [vmem:[%s3080_s24 + $0x658] sm:$0xff] }
  0x24   : > { %1224 = vmatpush.msra.mxu0 %v428_v7  ;;  %2874 = vmatpush.msra.mxu1 %v428_v7  ;;  %v181_v46 = vld [vmem:[%s3080_s24 + $0x48] sm:$0xff]  ;;  %v182_v50 = vld [vmem:[%s3080_s24 + $0x50] sm:$0xff]  ;;  %v183_v54 = vld [vmem:[%s3080_s24 + $0x58] sm:$0xff] }
  0x25   : > { %2591 = vmatmul.msk.f32.vlgmr.msra.gmra.mxu0 %vm440_vm0, %v172_v10  ;;  %2655 = vmatmul.msk.f32.vlgmr.msra.gmra.mxu1 %vm440_vm0, %v236_v11  ;;  %v245_v47 = vld [vmem:[%s3080_s24 + $0x248] sm:$0xff]  ;;  %v246_v51 = vld [vmem:[%s3080_s24 + $0x250] sm:$0xff]  ;;  %v247_v55 = vld [vmem:[%s3080_s24 + $0x258] sm:$0xff] }
  0x26   : > { %v312_v56 = vld [vmem:[%s3080_s24 + $0x460] sm:$0xff]  ;;  %v313_v60 = vld [vmem:[%s3080_s24 + $0x468] sm:$0xff]  ;;  %v314_v0 = vld [vmem:[%s3080_s24 + $0x470] sm:$0xff] }
  0x27   : > { %v376_v57 = vld [vmem:[%s3080_s24 + $0x660] sm:$0xff]  ;;  %v377_v61 = vld [vmem:[%s3080_s24 + $0x668] sm:$0xff]  ;;  %v378_v1 = vld [vmem:[%s3080_s24 + $0x670] sm:$0xff] }
  0x28   : > { %v184_v58 = vld [vmem:[%s3080_s24 + $0x60] sm:$0xff]  ;;  %v185_v62 = vld [vmem:[%s3080_s24 + $0x68] sm:$0xff]  ;;  %v186_v2 = vld [vmem:[%s3080_s24 + $0x70] sm:$0xff] }
  0x29   : > { %v248_v59 = vld [vmem:[%s3080_s24 + $0x260] sm:$0xff]  ;;  %v249_v63 = vld [vmem:[%s3080_s24 + $0x268] sm:$0xff]  ;;  %v250_v3 = vld [vmem:[%s3080_s24 + $0x270] sm:$0xff] }
  0x2a   : > { %v315_v4 = vld [vmem:[%s3080_s24 + $0x478] sm:$0xff]  ;;  %v3217_v8 = vld [vmem:[%s4165_s2] ss:$0 sm:$0xff] }
  0x2b   : > { %2720 = vmatmul.msk.f32.gmra.mxu2 %vm440_vm0, %v301_v12  ;;  %2784 = vmatmul.msk.f32.gmra.mxu3 %vm440_vm0, %v365_v13  ;;  %v379_v5 = vld [vmem:[%s3080_s24 + $0x678] sm:$0xff]  ;;  %v316_v9 = vld [vmem:[%s3080_s24 + $0x480] sm:$0xff] }
  0x2c   : > { %v187_v6 = vld [vmem:[%s3080_s24 + $0x78] sm:$0xff]  ;;  %v380_v10 = vld [vmem:[%s3080_s24 + $0x680] sm:$0xff] }
  0x2d   : > { %2592 = vmatmul.msk.f32.gmra.mxu0 %vm440_vm0, %v173_v14  ;;  %2656 = vmatmul.msk.f32.gmra.mxu1 %vm440_vm0, %v237_v15  ;;  %v251_v7 = vld [vmem:[%s3080_s24 + $0x278] sm:$0xff]  ;;  %v188_v13 = vld [vmem:[%s3080_s24 + $0x80] sm:$0xff] }
  0x2e   : > { %v252_v14 = vld [vmem:[%s3080_s24 + $0x280] sm:$0xff] }
  0x33   : > { %2721 = vmatmul.msk.f32.gmra.mxu2 %vm440_vm0, %v302_v16  ;;  %2785 = vmatmul.msk.f32.gmra.mxu3 %vm440_vm0, %v366_v17 }
  0x35   : > { %2593 = vmatmul.msk.f32.gmra.mxu0 %vm440_vm0, %v174_v18  ;;  %2657 = vmatmul.msk.f32.gmra.mxu1 %vm440_vm0, %v238_v19 }
  0x3b   : > { %2722 = vmatmul.msk.f32.gmra.mxu2 %vm440_vm0, %v303_v20  ;;  %2786 = vmatmul.msk.f32.gmra.mxu3 %vm440_vm0, %v367_v21 }
  0x3d   : > { %2594 = vmatmul.msk.f32.gmra.mxu0 %vm440_vm0, %v175_v22  ;;  %2658 = vmatmul.msk.f32.gmra.mxu1 %vm440_vm0, %v239_v23  ;;  %v317_v23 = vld [vmem:[%s3080_s24 + $0x488] sm:$0xff] }
  0x43   : > { %2723 = vmatmul.msk.f32.gmra.mxu2 %vm440_vm0, %v304_v24  ;;  %2787 = vmatmul.msk.f32.gmra.mxu3 %vm440_vm0, %v368_v25  ;;  %v381_v24 = vld [vmem:[%s3080_s24 + $0x688] sm:$0xff] }
  0x45   : > { %2595 = vmatmul.msk.f32.gmra.mxu0 %vm440_vm0, %v176_v26  ;;  %2659 = vmatmul.msk.f32.gmra.mxu1 %vm440_vm0, %v240_v27 }
  0x4b   : > { %2724 = vmatmul.msk.f32.gmra.mxu2 %vm440_vm0, %v305_v28  ;;  %2788 = vmatmul.msk.f32.gmra.mxu3 %vm440_vm0, %v369_v29  ;;  %v189_v29 = vld [vmem:[%s3080_s24 + $0x88] sm:$0xff] }
  0x4d   : > { %2596 = vmatmul.msk.f32.gmra.mxu0 %vm440_vm0, %v177_v30  ;;  %2660 = vmatmul.msk.f32.gmra.mxu1 %vm440_vm0, %v241_v31  ;;  %v253_v30 = vld [vmem:[%s3080_s24 + $0x288] sm:$0xff] }
  0x53   : > { %2725 = vmatmul.msk.f32.gmra.mxu2 %vm440_vm0, %v306_v32  ;;  %2789 = vmatmul.msk.f32.gmra.mxu3 %vm440_vm0, %v370_v33 }
  0x55   : > { %2597 = vmatmul.msk.f32.gmra.mxu0 %vm440_vm0, %v178_v34  ;;  %2661 = vmatmul.msk.f32.gmra.mxu1 %vm440_vm0, %v242_v35 }
  0x5b   : > { %2726 = vmatmul.msk.f32.gmra.mxu2 %vm440_vm0, %v307_v36  ;;  %2790 = vmatmul.msk.f32.gmra.mxu3 %vm440_vm0, %v371_v37 }
  0x5d   : > { %2598 = vmatmul.msk.f32.gmra.mxu0 %vm440_vm0, %v179_v38  ;;  %2662 = vmatmul.msk.f32.gmra.mxu1 %vm440_vm0, %v243_v39  ;;  %v318_v39 = vld [vmem:[%s3080_s24 + $0x490] sm:$0xff] }
  0x63   : > { %2727 = vmatmul.msk.f32.gmra.mxu2 %vm440_vm0, %v308_v40  ;;  %2791 = vmatmul.msk.f32.gmra.mxu3 %vm440_vm0, %v372_v41  ;;  %v382_v40 = vld [vmem:[%s3080_s24 + $0x690] sm:$0xff] }
  0x65   : > { %2599 = vmatmul.msk.f32.gmra.mxu0 %vm440_vm0, %v180_v42  ;;  %2663 = vmatmul.msk.f32.gmra.mxu1 %vm440_vm0, %v244_v43 }
  0x6b   : > { %2728 = vmatmul.msk.f32.gmra.mxu2 %vm440_vm0, %v309_v44  ;;  %2792 = vmatmul.msk.f32.gmra.mxu3 %vm440_vm0, %v373_v45  ;;  %v190_v45 = vld [vmem:[%s3080_s24 + $0x90] sm:$0xff] }
  0x6d   : > { %2600 = vmatmul.msk.f32.gmra.mxu0 %vm440_vm0, %v181_v46  ;;  %2664 = vmatmul.msk.f32.gmra.mxu1 %vm440_vm0, %v245_v47  ;;  %v254_v46 = vld [vmem:[%s3080_s24 + $0x290] sm:$0xff] }
  0x73   : > { %2729 = vmatmul.msk.f32.gmra.mxu2 %vm440_vm0, %v310_v48  ;;  %2793 = vmatmul.msk.f32.gmra.mxu3 %vm440_vm0, %v374_v49 }
  0x75   : > { %2601 = vmatmul.msk.f32.gmra.mxu0 %vm440_vm0, %v182_v50  ;;  %2665 = vmatmul.msk.f32.gmra.mxu1 %vm440_vm0, %v246_v51 }
  0x7b   : > { %2730 = vmatmul.msk.f32.gmra.mxu2 %vm440_vm0, %v311_v52  ;;  %2794 = vmatmul.msk.f32.gmra.mxu3 %vm440_vm0, %v375_v53 }
  0x7d   : > { %2602 = vmatmul.msk.f32.gmra.mxu0 %vm440_vm0, %v183_v54  ;;  %2666 = vmatmul.msk.f32.gmra.mxu1 %vm440_vm0, %v247_v55  ;;  %v319_v55 = vld [vmem:[%s3080_s24 + $0x498] sm:$0xff] }
  0x83   : > { %2731 = vmatmul.msk.f32.gmra.mxu2 %vm440_vm0, %v312_v56  ;;  %2795 = vmatmul.msk.f32.gmra.mxu3 %vm440_vm0, %v376_v57  ;;  %v383_v56 = vld [vmem:[%s3080_s24 + $0x698] sm:$0xff] }
  0x85   : > { %2603 = vmatmul.msk.f32.gmra.mxu0 %vm440_vm0, %v184_v58  ;;  %2667 = vmatmul.msk.f32.gmra.mxu1 %vm440_vm0, %v248_v59 }
  0x8b   : > { %2732 = vmatmul.msk.f32.gmra.mxu2 %vm440_vm0, %v313_v60  ;;  %2796 = vmatmul.msk.f32.gmra.mxu3 %vm440_vm0, %v377_v61  ;;  %v191_v61 = vld [vmem:[%s3080_s24 + $0x98] sm:$0xff] }
  0x8d   : > { %2604 = vmatmul.msk.f32.gmra.mxu0 %vm440_vm0, %v185_v62  ;;  %2668 = vmatmul.msk.f32.gmra.mxu1 %vm440_vm0, %v249_v63  ;;  %v255_v62 = vld [vmem:[%s3080_s24 + $0x298] sm:$0xff] }
  0x93   : > { %2733 = vmatmul.msk.f32.gmra.mxu2 %vm440_vm0, %v314_v0  ;;  %2797 = vmatmul.msk.f32.gmra.mxu3 %vm440_vm0, %v378_v1 }
  0x95   : > { %2605 = vmatmul.msk.f32.gmra.mxu0 %vm440_vm0, %v186_v2  ;;  %2669 = vmatmul.msk.f32.gmra.mxu1 %vm440_vm0, %v250_v3 }
  0x9b   : > { %2734 = vmatmul.msk.f32.gmra.mxu2 %vm440_vm0, %v315_v4  ;;  %2798 = vmatmul.msk.f32.gmra.mxu3 %vm440_vm0, %v379_v5 }
  0x9d   : > { %2606 = vmatmul.msk.f32.gmra.mxu0 %vm440_vm0, %v187_v6  ;;  %2670 = vmatmul.msk.f32.gmra.mxu1 %vm440_vm0, %v251_v7  ;;  %v320_v7 = vld [vmem:[%s3080_s24 + $0x4a0] sm:$0xff] }
  0xa2   : > { %v1226_v11 = vpop.f32.mrf.mxu0  ;;  %v1418_v12 = vpop.f32.mrf.mxu1 }
  0xa3   : > { %2735 = vmatmul.msk.f32.gmra.mxu2 %vm440_vm0, %v316_v9  ;;  %2799 = vmatmul.msk.f32.gmra.mxu3 %vm440_vm0, %v380_v10  ;;  %v1227_v15 = vadd.f32 %v3217_v8, %v1226_v11  ;;  %v1419_v16 = vadd.f32 %v3217_v8, %v1418_v12  ;;  %v384_v9 = vld [vmem:[%s3080_s24 + $0x6a0] sm:$0xff] }
  0xa5   : > { %v1994_v17 = vmax.f32 %v1227_v15, 0.0  ;;  %v2058_v18 = vmax.f32 %v1419_v16, 0.0  ;;  %2607 = vmatmul.msk.f32.gmra.mxu0 %vm440_vm0, %v188_v13  ;;  %2671 = vmatmul.msk.f32.gmra.mxu1 %vm440_vm0, %v252_v14  ;;  %v192_v14 = vld [vmem:[%s3080_s24 + $0xa0] sm:$0xff] }
  0xa6   : > { %v1610_v19 = vpop.f32.mrf.mxu2  ;;  %v1802_v20 = vpop.f32.mrf.mxu3  ;;  %v256_v15 = vld [vmem:[%s3080_s24 + $0x2a0] sm:$0xff] }
  0xa7   : > { %2250 = vst [vmem:[%s3231_s4] sm:$0xff] %v1994_v17  ;;  %v1611_v21 = vadd.f32 %v3217_v8, %v1610_v19  ;;  %v1803_v22 = vadd.f32 %v3217_v8, %v1802_v20 }
  0xa8   : > { %2314 = vst [vmem:[%s3231_s4 + $0x200] sm:$0xff] %v2058_v18 }
  0xa9   : > { %v2122_v25 = vmax.f32 %v1611_v21, 0.0  ;;  %v2186_v26 = vmax.f32 %v1803_v22, 0.0 }
  0xaa   : > { %v1229_v27 = vpop.f32.mrf.mxu0  ;;  %v1421_v28 = vpop.f32.mrf.mxu1 }
  0xab   : > { %2378 = vst [vmem:[%s3231_s4 + $0x400] sm:$0xff] %v2122_v25  ;;  %2736 = vmatmul.msk.f32.gmra.mxu2 %vm440_vm0, %v317_v23  ;;  %2800 = vmatmul.msk.f32.gmra.mxu3 %vm440_vm0, %v381_v24  ;;  %v1230_v31 = vadd.f32 %v3217_v8, %v1229_v27  ;;  %v1422_v32 = vadd.f32 %v3217_v8, %v1421_v28  ;;  %v321_v24 = vld [vmem:[%s3080_s24 + $0x4a8] sm:$0xff] }
  0xac   : > { %2442 = vst [vmem:[%s3231_s4 + $0x600] sm:$0xff] %v2186_v26  ;;  %v385_v25 = vld [vmem:[%s3080_s24 + $0x6a8] sm:$0xff] }
  0xad   : > { %v1995_v33 = vmax.f32 %v1230_v31, 0.0  ;;  %v2059_v34 = vmax.f32 %v1422_v32, 0.0  ;;  %2608 = vmatmul.msk.f32.gmra.mxu0 %vm440_vm0, %v189_v29  ;;  %2672 = vmatmul.msk.f32.gmra.mxu1 %vm440_vm0, %v253_v30  ;;  %v193_v30 = vld [vmem:[%s3080_s24 + $0xa8] sm:$0xff] }
  0xae   : > { %v1613_v35 = vpop.f32.mrf.mxu2  ;;  %v1805_v36 = vpop.f32.mrf.mxu3  ;;  %v257_v31 = vld [vmem:[%s3080_s24 + $0x2a8] sm:$0xff] }
  0xaf   : > { %2251 = vst [vmem:[%s3231_s4 + $0x8] sm:$0xff] %v1995_v33  ;;  %v1614_v37 = vadd.f32 %v3217_v8, %v1613_v35  ;;  %v1806_v38 = vadd.f32 %v3217_v8, %v1805_v36 }
  0xb0   : > { %2315 = vst [vmem:[%s3231_s4 + $0x208] sm:$0xff] %v2059_v34 }
  0xb1   : > { %v2123_v41 = vmax.f32 %v1614_v37, 0.0  ;;  %v2187_v42 = vmax.f32 %v1806_v38, 0.0 }
  0xb2   : > { %v1232_v43 = vpop.f32.mrf.mxu0  ;;  %v1424_v44 = vpop.f32.mrf.mxu1 }
  0xb3   : > { %2379 = vst [vmem:[%s3231_s4 + $0x408] sm:$0xff] %v2123_v41  ;;  %2737 = vmatmul.msk.f32.gmra.mxu2 %vm440_vm0, %v318_v39  ;;  %2801 = vmatmul.msk.f32.gmra.mxu3 %vm440_vm0, %v382_v40  ;;  %v1233_v47 = vadd.f32 %v3217_v8, %v1232_v43  ;;  %v1425_v48 = vadd.f32 %v3217_v8, %v1424_v44  ;;  %v322_v40 = vld [vmem:[%s3080_s24 + $0x4b0] sm:$0xff] }
  0xb4   : > { %2443 = vst [vmem:[%s3231_s4 + $0x608] sm:$0xff] %v2187_v42  ;;  %v386_v41 = vld [vmem:[%s3080_s24 + $0x6b0] sm:$0xff] }
  0xb5   : > { %v1996_v49 = vmax.f32 %v1233_v47, 0.0  ;;  %v2060_v50 = vmax.f32 %v1425_v48, 0.0  ;;  %2609 = vmatmul.msk.f32.gmra.mxu0 %vm440_vm0, %v190_v45  ;;  %2673 = vmatmul.msk.f32.gmra.mxu1 %vm440_vm0, %v254_v46  ;;  %v194_v46 = vld [vmem:[%s3080_s24 + $0xb0] sm:$0xff] }
  0xb6   : > { %v1616_v51 = vpop.f32.mrf.mxu2  ;;  %v1808_v52 = vpop.f32.mrf.mxu3  ;;  %v258_v47 = vld [vmem:[%s3080_s24 + $0x2b0] sm:$0xff] }
  0xb7   : > { %2252 = vst [vmem:[%s3231_s4 + $0x10] sm:$0xff] %v1996_v49  ;;  %v1617_v53 = vadd.f32 %v3217_v8, %v1616_v51  ;;  %v1809_v54 = vadd.f32 %v3217_v8, %v1808_v52 }
  0xb8   : > { %2316 = vst [vmem:[%s3231_s4 + $0x210] sm:$0xff] %v2060_v50 }
  0xb9   : > { %v2124_v57 = vmax.f32 %v1617_v53, 0.0  ;;  %v2188_v58 = vmax.f32 %v1809_v54, 0.0 }
  0xba   : > { %v1235_v59 = vpop.f32.mrf.mxu0  ;;  %v1427_v60 = vpop.f32.mrf.mxu1 }
  0xbb   : > { %2380 = vst [vmem:[%s3231_s4 + $0x410] sm:$0xff] %v2124_v57  ;;  %2738 = vmatmul.msk.f32.gmra.mxu2 %vm440_vm0, %v319_v55  ;;  %2802 = vmatmul.msk.f32.gmra.mxu3 %vm440_vm0, %v383_v56  ;;  %v1236_v63 = vadd.f32 %v3217_v8, %v1235_v59  ;;  %v1428_v0 = vadd.f32 %v3217_v8, %v1427_v60  ;;  %v323_v56 = vld [vmem:[%s3080_s24 + $0x4b8] sm:$0xff] }
  0xbc   : > { %2444 = vst [vmem:[%s3231_s4 + $0x610] sm:$0xff] %v2188_v58  ;;  %v387_v57 = vld [vmem:[%s3080_s24 + $0x6b8] sm:$0xff] }
  0xbd   : > { %v1997_v1 = vmax.f32 %v1236_v63, 0.0  ;;  %v2061_v2 = vmax.f32 %v1428_v0, 0.0  ;;  %2610 = vmatmul.msk.f32.gmra.mxu0 %vm440_vm0, %v191_v61  ;;  %2674 = vmatmul.msk.f32.gmra.mxu1 %vm440_vm0, %v255_v62  ;;  %v195_v62 = vld [vmem:[%s3080_s24 + $0xb8] sm:$0xff] }
  0xbe   : > { %v1619_v3 = vpop.f32.mrf.mxu2  ;;  %v1811_v4 = vpop.f32.mrf.mxu3  ;;  %v259_v63 = vld [vmem:[%s3080_s24 + $0x2b8] sm:$0xff] }
  0xbf   : > { %2253 = vst [vmem:[%s3231_s4 + $0x18] sm:$0xff] %v1997_v1  ;;  %v1620_v5 = vadd.f32 %v3217_v8, %v1619_v3  ;;  %v1812_v6 = vadd.f32 %v3217_v8, %v1811_v4 }
  0xc0   : > { %2317 = vst [vmem:[%s3231_s4 + $0x218] sm:$0xff] %v2061_v2 }
  0xc1   : > { %v2125_v10 = vmax.f32 %v1620_v5, 0.0  ;;  %v2189_v11 = vmax.f32 %v1812_v6, 0.0 }
  0xc2   : > { %v1238_v12 = vpop.f32.mrf.mxu0  ;;  %v1430_v13 = vpop.f32.mrf.mxu1 }
  0xc3   : > { %2381 = vst [vmem:[%s3231_s4 + $0x418] sm:$0xff] %v2125_v10  ;;  %2739 = vmatmul.msk.f32.gmra.mxu2 %vm440_vm0, %v320_v7  ;;  %2803 = vmatmul.msk.f32.gmra.mxu3 %vm440_vm0, %v384_v9  ;;  %v1239_v16 = vadd.f32 %v3217_v8, %v1238_v12  ;;  %v1431_v17 = vadd.f32 %v3217_v8, %v1430_v13  ;;  %v324_v9 = vld [vmem:[%s3080_s24 + $0x4c0] sm:$0xff] }
  0xc4   : > { %2445 = vst [vmem:[%s3231_s4 + $0x618] sm:$0xff] %v2189_v11  ;;  %v388_v10 = vld [vmem:[%s3080_s24 + $0x6c0] sm:$0xff] }
  0xc5   : > { %v1998_v18 = vmax.f32 %v1239_v16, 0.0  ;;  %v2062_v19 = vmax.f32 %v1431_v17, 0.0  ;;  %2611 = vmatmul.msk.f32.gmra.mxu0 %vm440_vm0, %v192_v14  ;;  %2675 = vmatmul.msk.f32.gmra.mxu1 %vm440_vm0, %v256_v15  ;;  %v196_v15 = vld [vmem:[%s3080_s24 + $0xc0] sm:$0xff] }
  0xc6   : > { %v1622_v20 = vpop.f32.mrf.mxu2  ;;  %v1814_v21 = vpop.f32.mrf.mxu3  ;;  %v260_v16 = vld [vmem:[%s3080_s24 + $0x2c0] sm:$0xff] }
  0xc7   : > { %2254 = vst [vmem:[%s3231_s4 + $0x20] sm:$0xff] %v1998_v18  ;;  %v1623_v22 = vadd.f32 %v3217_v8, %v1622_v20  ;;  %v1815_v23 = vadd.f32 %v3217_v8, %v1814_v21 }
  0xc8   : > { %2318 = vst [vmem:[%s3231_s4 + $0x220] sm:$0xff] %v2062_v19 }
  0xc9   : > { %v2126_v26 = vmax.f32 %v1623_v22, 0.0  ;;  %v2190_v27 = vmax.f32 %v1815_v23, 0.0 }
  0xca   : > { %v1241_v28 = vpop.f32.mrf.mxu0  ;;  %v1433_v29 = vpop.f32.mrf.mxu1 }
  0xcb   : > { %2382 = vst [vmem:[%s3231_s4 + $0x420] sm:$0xff] %v2126_v26  ;;  %2740 = vmatmul.msk.f32.gmra.mxu2 %vm440_vm0, %v321_v24  ;;  %2804 = vmatmul.msk.f32.gmra.mxu3 %vm440_vm0, %v385_v25  ;;  %v1242_v32 = vadd.f32 %v3217_v8, %v1241_v28  ;;  %v1434_v33 = vadd.f32 %v3217_v8, %v1433_v29  ;;  %v325_v25 = vld [vmem:[%s3080_s24 + $0x4c8] sm:$0xff] }
  0xcc   : > { %2446 = vst [vmem:[%s3231_s4 + $0x620] sm:$0xff] %v2190_v27  ;;  %v389_v26 = vld [vmem:[%s3080_s24 + $0x6c8] sm:$0xff] }
  0xcd   : > { %v1999_v34 = vmax.f32 %v1242_v32, 0.0  ;;  %v2063_v35 = vmax.f32 %v1434_v33, 0.0  ;;  %2612 = vmatmul.msk.f32.gmra.mxu0 %vm440_vm0, %v193_v30  ;;  %2676 = vmatmul.msk.f32.gmra.mxu1 %vm440_vm0, %v257_v31  ;;  %v197_v31 = vld [vmem:[%s3080_s24 + $0xc8] sm:$0xff] }
  0xce   : > { %v1625_v36 = vpop.f32.mrf.mxu2  ;;  %v1817_v37 = vpop.f32.mrf.mxu3  ;;  %v261_v32 = vld [vmem:[%s3080_s24 + $0x2c8] sm:$0xff] }
  0xcf   : > { %2255 = vst [vmem:[%s3231_s4 + $0x28] sm:$0xff] %v1999_v34  ;;  %v1626_v38 = vadd.f32 %v3217_v8, %v1625_v36  ;;  %v1818_v39 = vadd.f32 %v3217_v8, %v1817_v37 }
  0xd0   : > { %2319 = vst [vmem:[%s3231_s4 + $0x228] sm:$0xff] %v2063_v35 }
  0xd1   : > { %v2127_v42 = vmax.f32 %v1626_v38, 0.0  ;;  %v2191_v43 = vmax.f32 %v1818_v39, 0.0 }
  0xd2   : > { %v1244_v44 = vpop.f32.mrf.mxu0  ;;  %v1436_v45 = vpop.f32.mrf.mxu1 }
  0xd3   : > { %2383 = vst [vmem:[%s3231_s4 + $0x428] sm:$0xff] %v2127_v42  ;;  %2741 = vmatmul.msk.f32.gmra.mxu2 %vm440_vm0, %v322_v40  ;;  %2805 = vmatmul.msk.f32.gmra.mxu3 %vm440_vm0, %v386_v41  ;;  %v1245_v48 = vadd.f32 %v3217_v8, %v1244_v44  ;;  %v1437_v49 = vadd.f32 %v3217_v8, %v1436_v45  ;;  %v326_v41 = vld [vmem:[%s3080_s24 + $0x4d0] sm:$0xff] }
  0xd4   : > { %2447 = vst [vmem:[%s3231_s4 + $0x628] sm:$0xff] %v2191_v43  ;;  %v390_v42 = vld [vmem:[%s3080_s24 + $0x6d0] sm:$0xff] }
  0xd5   : > { %v2000_v50 = vmax.f32 %v1245_v48, 0.0  ;;  %v2064_v51 = vmax.f32 %v1437_v49, 0.0  ;;  %2613 = vmatmul.msk.f32.gmra.mxu0 %vm440_vm0, %v194_v46  ;;  %2677 = vmatmul.msk.f32.gmra.mxu1 %vm440_vm0, %v258_v47  ;;  %v198_v47 = vld [vmem:[%s3080_s24 + $0xd0] sm:$0xff] }
  0xd6   : > { %v1628_v52 = vpop.f32.mrf.mxu2  ;;  %v1820_v53 = vpop.f32.mrf.mxu3  ;;  %v262_v48 = vld [vmem:[%s3080_s24 + $0x2d0] sm:$0xff] }
  0xd7   : > { %2256 = vst [vmem:[%s3231_s4 + $0x30] sm:$0xff] %v2000_v50  ;;  %v1629_v54 = vadd.f32 %v3217_v8, %v1628_v52  ;;  %v1821_v55 = vadd.f32 %v3217_v8, %v1820_v53 }
  0xd8   : > { %2320 = vst [vmem:[%s3231_s4 + $0x230] sm:$0xff] %v2064_v51 }
  0xd9   : > { %v2128_v58 = vmax.f32 %v1629_v54, 0.0  ;;  %v2192_v59 = vmax.f32 %v1821_v55, 0.0 }
  0xda   : > { %v1247_v60 = vpop.f32.mrf.mxu0  ;;  %v1439_v61 = vpop.f32.mrf.mxu1 }
  0xdb   : > { %2384 = vst [vmem:[%s3231_s4 + $0x430] sm:$0xff] %v2128_v58  ;;  %2742 = vmatmul.msk.f32.gmra.mxu2 %vm440_vm0, %v323_v56  ;;  %2806 = vmatmul.msk.f32.gmra.mxu3 %vm440_vm0, %v387_v57  ;;  %v1248_v0 = vadd.f32 %v3217_v8, %v1247_v60  ;;  %v1440_v1 = vadd.f32 %v3217_v8, %v1439_v61  ;;  %v327_v57 = vld [vmem:[%s3080_s24 + $0x4d8] sm:$0xff] }
  0xdc   : > { %2448 = vst [vmem:[%s3231_s4 + $0x630] sm:$0xff] %v2192_v59  ;;  %v391_v58 = vld [vmem:[%s3080_s24 + $0x6d8] sm:$0xff] }
  0xdd   : > { %v2001_v2 = vmax.f32 %v1248_v0, 0.0  ;;  %v2065_v3 = vmax.f32 %v1440_v1, 0.0  ;;  %2614 = vmatmul.msk.f32.gmra.mxu0 %vm440_vm0, %v195_v62  ;;  %2678 = vmatmul.msk.f32.gmra.mxu1 %vm440_vm0, %v259_v63  ;;  %v199_v63 = vld [vmem:[%s3080_s24 + $0xd8] sm:$0xff] }
  0xde   : > { %v1631_v4 = vpop.f32.mrf.mxu2  ;;  %v1823_v5 = vpop.f32.mrf.mxu3  ;;  %v263_v0 = vld [vmem:[%s3080_s24 + $0x2d8] sm:$0xff] }
  0xdf   : > { %2257 = vst [vmem:[%s3231_s4 + $0x38] sm:$0xff] %v2001_v2  ;;  %v1632_v6 = vadd.f32 %v3217_v8, %v1631_v4  ;;  %v1824_v7 = vadd.f32 %v3217_v8, %v1823_v5 }
  0xe0   : > { %2321 = vst [vmem:[%s3231_s4 + $0x238] sm:$0xff] %v2065_v3 }
  0xe1   : > { %v2129_v11 = vmax.f32 %v1632_v6, 0.0  ;;  %v2193_v12 = vmax.f32 %v1824_v7, 0.0 }
  0xe2   : > { %v1250_v13 = vpop.f32.mrf.mxu0  ;;  %v1442_v14 = vpop.f32.mrf.mxu1 }
  0xe3   : > { %2385 = vst [vmem:[%s3231_s4 + $0x438] sm:$0xff] %v2129_v11  ;;  %2743 = vmatmul.msk.f32.gmra.mxu2 %vm440_vm0, %v324_v9  ;;  %2807 = vmatmul.msk.f32.gmra.mxu3 %vm440_vm0, %v388_v10  ;;  %v1251_v17 = vadd.f32 %v3217_v8, %v1250_v13  ;;  %v1443_v18 = vadd.f32 %v3217_v8, %v1442_v14  ;;  %v328_v10 = vld [vmem:[%s3080_s24 + $0x4e0] sm:$0xff] }
  0xe4   : > { %2449 = vst [vmem:[%s3231_s4 + $0x638] sm:$0xff] %v2193_v12  ;;  %v392_v11 = vld [vmem:[%s3080_s24 + $0x6e0] sm:$0xff] }
  0xe5   : > { %v2002_v19 = vmax.f32 %v1251_v17, 0.0  ;;  %v2066_v20 = vmax.f32 %v1443_v18, 0.0  ;;  %2615 = vmatmul.msk.f32.gmra.mxu0 %vm440_vm0, %v196_v15  ;;  %2679 = vmatmul.msk.f32.gmra.mxu1 %vm440_vm0, %v260_v16  ;;  %v200_v16 = vld [vmem:[%s3080_s24 + $0xe0] sm:$0xff] }
  0xe6   : > { %v1634_v21 = vpop.f32.mrf.mxu2  ;;  %v1826_v22 = vpop.f32.mrf.mxu3  ;;  %v264_v17 = vld [vmem:[%s3080_s24 + $0x2e0] sm:$0xff] }
  0xe7   : > { %2258 = vst [vmem:[%s3231_s4 + $0x40] sm:$0xff] %v2002_v19  ;;  %v1635_v23 = vadd.f32 %v3217_v8, %v1634_v21  ;;  %v1827_v24 = vadd.f32 %v3217_v8, %v1826_v22 }
  0xe8   : > { %2322 = vst [vmem:[%s3231_s4 + $0x240] sm:$0xff] %v2066_v20 }
  0xe9   : > { %v2130_v27 = vmax.f32 %v1635_v23, 0.0  ;;  %v2194_v28 = vmax.f32 %v1827_v24, 0.0 }
  0xea   : > { %v1253_v29 = vpop.f32.mrf.mxu0  ;;  %v1445_v30 = vpop.f32.mrf.mxu1 }
  0xeb   : > { %2386 = vst [vmem:[%s3231_s4 + $0x440] sm:$0xff] %v2130_v27  ;;  %2744 = vmatmul.msk.f32.gmra.mxu2 %vm440_vm0, %v325_v25  ;;  %2808 = vmatmul.msk.f32.gmra.mxu3 %vm440_vm0, %v389_v26  ;;  %v1254_v33 = vadd.f32 %v3217_v8, %v1253_v29  ;;  %v1446_v34 = vadd.f32 %v3217_v8, %v1445_v30  ;;  %v329_v26 = vld [vmem:[%s3080_s24 + $0x4e8] sm:$0xff] }
  0xec   : > { %2450 = vst [vmem:[%s3231_s4 + $0x640] sm:$0xff] %v2194_v28  ;;  %v393_v27 = vld [vmem:[%s3080_s24 + $0x6e8] sm:$0xff] }
  0xed   : > { %v2003_v35 = vmax.f32 %v1254_v33, 0.0  ;;  %v2067_v36 = vmax.f32 %v1446_v34, 0.0  ;;  %2616 = vmatmul.msk.f32.gmra.mxu0 %vm440_vm0, %v197_v31  ;;  %2680 = vmatmul.msk.f32.gmra.mxu1 %vm440_vm0, %v261_v32  ;;  %v201_v32 = vld [vmem:[%s3080_s24 + $0xe8] sm:$0xff] }
  0xee   : > { %v1637_v37 = vpop.f32.mrf.mxu2  ;;  %v1829_v38 = vpop.f32.mrf.mxu3  ;;  %v265_v33 = vld [vmem:[%s3080_s24 + $0x2e8] sm:$0xff] }
  0xef   : > { %2259 = vst [vmem:[%s3231_s4 + $0x48] sm:$0xff] %v2003_v35  ;;  %v1638_v39 = vadd.f32 %v3217_v8, %v1637_v37  ;;  %v1830_v40 = vadd.f32 %v3217_v8, %v1829_v38 }
  0xf0   : > { %2323 = vst [vmem:[%s3231_s4 + $0x248] sm:$0xff] %v2067_v36 }
  0xf1   : > { %v2131_v43 = vmax.f32 %v1638_v39, 0.0  ;;  %v2195_v44 = vmax.f32 %v1830_v40, 0.0 }
  0xf2   : > { %v1256_v45 = vpop.f32.mrf.mxu0  ;;  %v1448_v46 = vpop.f32.mrf.mxu1 }
  0xf3   : > { %2387 = vst [vmem:[%s3231_s4 + $0x448] sm:$0xff] %v2131_v43  ;;  %2745 = vmatmul.msk.f32.gmra.mxu2 %vm440_vm0, %v326_v41  ;;  %2809 = vmatmul.msk.f32.gmra.mxu3 %vm440_vm0, %v390_v42  ;;  %v1257_v49 = vadd.f32 %v3217_v8, %v1256_v45  ;;  %v1449_v50 = vadd.f32 %v3217_v8, %v1448_v46  ;;  %v330_v42 = vld [vmem:[%s3080_s24 + $0x4f0] sm:$0xff] }
  0xf4   : > { %2451 = vst [vmem:[%s3231_s4 + $0x648] sm:$0xff] %v2195_v44  ;;  %v394_v43 = vld [vmem:[%s3080_s24 + $0x6f0] sm:$0xff] }
  0xf5   : > { %v2004_v51 = vmax.f32 %v1257_v49, 0.0  ;;  %v2068_v52 = vmax.f32 %v1449_v50, 0.0  ;;  %2617 = vmatmul.msk.f32.gmra.mxu0 %vm440_vm0, %v198_v47  ;;  %2681 = vmatmul.msk.f32.gmra.mxu1 %vm440_vm0, %v262_v48  ;;  %v202_v48 = vld [vmem:[%s3080_s24 + $0xf0] sm:$0xff] }
  0xf6   : > { %v1640_v53 = vpop.f32.mrf.mxu2  ;;  %v1832_v54 = vpop.f32.mrf.mxu3  ;;  %v266_v49 = vld [vmem:[%s3080_s24 + $0x2f0] sm:$0xff] }
  0xf7   : > { %2260 = vst [vmem:[%s3231_s4 + $0x50] sm:$0xff] %v2004_v51  ;;  %v1641_v55 = vadd.f32 %v3217_v8, %v1640_v53  ;;  %v1833_v56 = vadd.f32 %v3217_v8, %v1832_v54 }
  0xf8   : > { %2324 = vst [vmem:[%s3231_s4 + $0x250] sm:$0xff] %v2068_v52 }
  0xf9   : > { %v2132_v59 = vmax.f32 %v1641_v55, 0.0  ;;  %v2196_v60 = vmax.f32 %v1833_v56, 0.0 }
  0xfa   : > { %v1259_v61 = vpop.f32.mrf.mxu0  ;;  %v1451_v62 = vpop.f32.mrf.mxu1 }
  0xfb   : > { %2388 = vst [vmem:[%s3231_s4 + $0x450] sm:$0xff] %v2132_v59  ;;  %2746 = vmatmul.msk.f32.gmra.mxu2 %vm440_vm0, %v327_v57  ;;  %2810 = vmatmul.msk.f32.gmra.mxu3 %vm440_vm0, %v391_v58  ;;  %v1260_v1 = vadd.f32 %v3217_v8, %v1259_v61  ;;  %v1452_v2 = vadd.f32 %v3217_v8, %v1451_v62  ;;  %v331_v58 = vld [vmem:[%s3080_s24 + $0x4f8] sm:$0xff] }
  0xfc   : > { %2452 = vst [vmem:[%s3231_s4 + $0x650] sm:$0xff] %v2196_v60  ;;  %v395_v59 = vld [vmem:[%s3080_s24 + $0x6f8] sm:$0xff] }
  0xfd   : > { %v2005_v3 = vmax.f32 %v1260_v1, 0.0  ;;  %v2069_v4 = vmax.f32 %v1452_v2, 0.0  ;;  %2618 = vmatmul.msk.f32.gmra.mxu0 %vm440_vm0, %v199_v63  ;;  %2682 = vmatmul.msk.f32.gmra.mxu1 %vm440_vm0, %v263_v0  ;;  %v203_v0 = vld [vmem:[%s3080_s24 + $0xf8] sm:$0xff] }
  0xfe   : > { %v1643_v5 = vpop.f32.mrf.mxu2  ;;  %v1835_v6 = vpop.f32.mrf.mxu3  ;;  %v267_v1 = vld [vmem:[%s3080_s24 + $0x2f8] sm:$0xff] }
  0xff   : > { %2261 = vst [vmem:[%s3231_s4 + $0x58] sm:$0xff] %v2005_v3  ;;  %v1644_v7 = vadd.f32 %v3217_v8, %v1643_v5  ;;  %v1836_v9 = vadd.f32 %v3217_v8, %v1835_v6 }
 0x100   : > { %2325 = vst [vmem:[%s3231_s4 + $0x258] sm:$0xff] %v2069_v4 }
 0x101   : > { %v2133_v12 = vmax.f32 %v1644_v7, 0.0  ;;  %v2197_v13 = vmax.f32 %v1836_v9, 0.0 }
 0x102   : > { %v1262_v14 = vpop.f32.mrf.mxu0  ;;  %v1454_v15 = vpop.f32.mrf.mxu1 }
 0x103   : > { %2389 = vst [vmem:[%s3231_s4 + $0x458] sm:$0xff] %v2133_v12  ;;  %2747 = vmatmul.msk.f32.gmra.mxu2 %vm440_vm0, %v328_v10  ;;  %2811 = vmatmul.msk.f32.gmra.mxu3 %vm440_vm0, %v392_v11  ;;  %v1263_v18 = vadd.f32 %v3217_v8, %v1262_v14  ;;  %v1455_v19 = vadd.f32 %v3217_v8, %v1454_v15  ;;  %v332_v11 = vld [vmem:[%s3080_s24 + $0x500] sm:$0xff] }
 0x104   : > { %2453 = vst [vmem:[%s3231_s4 + $0x658] sm:$0xff] %v2197_v13  ;;  %v396_v12 = vld [vmem:[%s3080_s24 + $0x700] sm:$0xff] }
 0x105   : > { %v2006_v20 = vmax.f32 %v1263_v18, 0.0  ;;  %v2070_v21 = vmax.f32 %v1455_v19, 0.0  ;;  %2619 = vmatmul.msk.f32.gmra.mxu0 %vm440_vm0, %v200_v16  ;;  %2683 = vmatmul.msk.f32.gmra.mxu1 %vm440_vm0, %v264_v17  ;;  %v204_v17 = vld [vmem:[%s3080_s24 + $0x100] sm:$0xff] }
 0x106   : > { %v1646_v22 = vpop.f32.mrf.mxu2  ;;  %v1838_v23 = vpop.f32.mrf.mxu3  ;;  %v268_v18 = vld [vmem:[%s3080_s24 + $0x300] sm:$0xff] }
 0x107   : > { %2262 = vst [vmem:[%s3231_s4 + $0x60] sm:$0xff] %v2006_v20  ;;  %v1647_v24 = vadd.f32 %v3217_v8, %v1646_v22  ;;  %v1839_v25 = vadd.f32 %v3217_v8, %v1838_v23 }
 0x108   : > { %2326 = vst [vmem:[%s3231_s4 + $0x260] sm:$0xff] %v2070_v21 }
 0x109   : > { %v2134_v28 = vmax.f32 %v1647_v24, 0.0  ;;  %v2198_v29 = vmax.f32 %v1839_v25, 0.0 }
 0x10a   : > { %v1265_v30 = vpop.f32.mrf.mxu0  ;;  %v1457_v31 = vpop.f32.mrf.mxu1 }
 0x10b   : > { %2390 = vst [vmem:[%s3231_s4 + $0x460] sm:$0xff] %v2134_v28  ;;  %2748 = vmatmul.msk.f32.gmra.mxu2 %vm440_vm0, %v329_v26  ;;  %2812 = vmatmul.msk.f32.gmra.mxu3 %vm440_vm0, %v393_v27  ;;  %v1266_v34 = vadd.f32 %v3217_v8, %v1265_v30  ;;  %v1458_v35 = vadd.f32 %v3217_v8, %v1457_v31  ;;  %v333_v27 = vld [vmem:[%s3080_s24 + $0x508] sm:$0xff] }
 0x10c   : > { %2454 = vst [vmem:[%s3231_s4 + $0x660] sm:$0xff] %v2198_v29  ;;  %v397_v28 = vld [vmem:[%s3080_s24 + $0x708] sm:$0xff] }
 0x10d   : > { %v2007_v36 = vmax.f32 %v1266_v34, 0.0  ;;  %v2071_v37 = vmax.f32 %v1458_v35, 0.0  ;;  %2620 = vmatmul.msk.f32.gmra.mxu0 %vm440_vm0, %v201_v32  ;;  %2684 = vmatmul.msk.f32.gmra.mxu1 %vm440_vm0, %v265_v33  ;;  %v205_v33 = vld [vmem:[%s3080_s24 + $0x108] sm:$0xff] }
 0x10e   : > { %v1649_v38 = vpop.f32.mrf.mxu2  ;;  %v1841_v39 = vpop.f32.mrf.mxu3  ;;  %v269_v34 = vld [vmem:[%s3080_s24 + $0x308] sm:$0xff] }
 0x10f   : > { %2263 = vst [vmem:[%s3231_s4 + $0x68] sm:$0xff] %v2007_v36  ;;  %v1650_v40 = vadd.f32 %v3217_v8, %v1649_v38  ;;  %v1842_v41 = vadd.f32 %v3217_v8, %v1841_v39 }
 0x110   : > { %2327 = vst [vmem:[%s3231_s4 + $0x268] sm:$0xff] %v2071_v37 }
 0x111   : > { %v2135_v44 = vmax.f32 %v1650_v40, 0.0  ;;  %v2199_v45 = vmax.f32 %v1842_v41, 0.0 }
 0x112   : > { %v1268_v46 = vpop.f32.mrf.mxu0  ;;  %v1460_v47 = vpop.f32.mrf.mxu1 }
 0x113   : > { %2391 = vst [vmem:[%s3231_s4 + $0x468] sm:$0xff] %v2135_v44  ;;  %2749 = vmatmul.msk.f32.gmra.mxu2 %vm440_vm0, %v330_v42  ;;  %2813 = vmatmul.msk.f32.gmra.mxu3 %vm440_vm0, %v394_v43  ;;  %v1269_v50 = vadd.f32 %v3217_v8, %v1268_v46  ;;  %v1461_v51 = vadd.f32 %v3217_v8, %v1460_v47  ;;  %v334_v43 = vld [vmem:[%s3080_s24 + $0x510] sm:$0xff] }
 0x114   : > { %2455 = vst [vmem:[%s3231_s4 + $0x668] sm:$0xff] %v2199_v45  ;;  %v398_v44 = vld [vmem:[%s3080_s24 + $0x710] sm:$0xff] }
 0x115   : > { %v2008_v52 = vmax.f32 %v1269_v50, 0.0  ;;  %v2072_v53 = vmax.f32 %v1461_v51, 0.0  ;;  %2621 = vmatmul.msk.f32.gmra.mxu0 %vm440_vm0, %v202_v48  ;;  %2685 = vmatmul.msk.f32.gmra.mxu1 %vm440_vm0, %v266_v49  ;;  %v206_v49 = vld [vmem:[%s3080_s24 + $0x110] sm:$0xff] }
 0x116   : > { %v1652_v54 = vpop.f32.mrf.mxu2  ;;  %v1844_v55 = vpop.f32.mrf.mxu3  ;;  %v270_v50 = vld [vmem:[%s3080_s24 + $0x310] sm:$0xff] }
 0x117   : > { %2264 = vst [vmem:[%s3231_s4 + $0x70] sm:$0xff] %v2008_v52  ;;  %v1653_v56 = vadd.f32 %v3217_v8, %v1652_v54  ;;  %v1845_v57 = vadd.f32 %v3217_v8, %v1844_v55 }
 0x118   : > { %2328 = vst [vmem:[%s3231_s4 + $0x270] sm:$0xff] %v2072_v53 }
 0x119   : > { %v2136_v60 = vmax.f32 %v1653_v56, 0.0  ;;  %v2200_v61 = vmax.f32 %v1845_v57, 0.0 }
 0x11a   : > { %v1271_v62 = vpop.f32.mrf.mxu0  ;;  %v1463_v63 = vpop.f32.mrf.mxu1 }
 0x11b   : > { %2392 = vst [vmem:[%s3231_s4 + $0x470] sm:$0xff] %v2136_v60  ;;  %2750 = vmatmul.msk.f32.gmra.mxu2 %vm440_vm0, %v331_v58  ;;  %2814 = vmatmul.msk.f32.gmra.mxu3 %vm440_vm0, %v395_v59  ;;  %v1272_v2 = vadd.f32 %v3217_v8, %v1271_v62  ;;  %v1464_v3 = vadd.f32 %v3217_v8, %v1463_v63  ;;  %v335_v59 = vld [vmem:[%s3080_s24 + $0x518] sm:$0xff] }
 0x11c   : > { %2456 = vst [vmem:[%s3231_s4 + $0x670] sm:$0xff] %v2200_v61  ;;  %v399_v60 = vld [vmem:[%s3080_s24 + $0x718] sm:$0xff] }
 0x11d   : > { %v2009_v4 = vmax.f32 %v1272_v2, 0.0  ;;  %v2073_v5 = vmax.f32 %v1464_v3, 0.0  ;;  %2622 = vmatmul.msk.f32.gmra.mxu0 %vm440_vm0, %v203_v0  ;;  %2686 = vmatmul.msk.f32.gmra.mxu1 %vm440_vm0, %v267_v1  ;;  %v207_v1 = vld [vmem:[%s3080_s24 + $0x118] sm:$0xff] }
 0x11e   : > { %v1655_v6 = vpop.f32.mrf.mxu2  ;;  %v1847_v7 = vpop.f32.mrf.mxu3  ;;  %v271_v2 = vld [vmem:[%s3080_s24 + $0x318] sm:$0xff] }
 0x11f   : > { %2265 = vst [vmem:[%s3231_s4 + $0x78] sm:$0xff] %v2009_v4  ;;  %v1656_v9 = vadd.f32 %v3217_v8, %v1655_v6  ;;  %v1848_v10 = vadd.f32 %v3217_v8, %v1847_v7 }
 0x120   : > { %2329 = vst [vmem:[%s3231_s4 + $0x278] sm:$0xff] %v2073_v5 }
 0x121   : > { %v2137_v13 = vmax.f32 %v1656_v9, 0.0  ;;  %v2201_v14 = vmax.f32 %v1848_v10, 0.0 }
 0x122   : > { %v1274_v15 = vpop.f32.mrf.mxu0  ;;  %v1466_v16 = vpop.f32.mrf.mxu1 }
 0x123   : > { %2393 = vst [vmem:[%s3231_s4 + $0x478] sm:$0xff] %v2137_v13  ;;  %2751 = vmatmul.msk.f32.gmra.mxu2 %vm440_vm0, %v332_v11  ;;  %2815 = vmatmul.msk.f32.gmra.mxu3 %vm440_vm0, %v396_v12  ;;  %v1275_v19 = vadd.f32 %v3217_v8, %v1274_v15  ;;  %v1467_v20 = vadd.f32 %v3217_v8, %v1466_v16  ;;  %v336_v12 = vld [vmem:[%s3080_s24 + $0x520] sm:$0xff] }
 0x124   : > { %2457 = vst [vmem:[%s3231_s4 + $0x678] sm:$0xff] %v2201_v14  ;;  %v400_v13 = vld [vmem:[%s3080_s24 + $0x720] sm:$0xff] }
 0x125   : > { %v2010_v21 = vmax.f32 %v1275_v19, 0.0  ;;  %v2074_v22 = vmax.f32 %v1467_v20, 0.0  ;;  %2623 = vmatmul.msk.f32.gmra.mxu0 %vm440_vm0, %v204_v17  ;;  %2687 = vmatmul.msk.f32.gmra.mxu1 %vm440_vm0, %v268_v18  ;;  %v208_v18 = vld [vmem:[%s3080_s24 + $0x120] sm:$0xff] }
 0x126   : > { %v1658_v23 = vpop.f32.mrf.mxu2  ;;  %v1850_v24 = vpop.f32.mrf.mxu3  ;;  %v272_v19 = vld [vmem:[%s3080_s24 + $0x320] sm:$0xff] }
 0x127   : > { %2266 = vst [vmem:[%s3231_s4 + $0x80] sm:$0xff] %v2010_v21  ;;  %v1659_v25 = vadd.f32 %v3217_v8, %v1658_v23  ;;  %v1851_v26 = vadd.f32 %v3217_v8, %v1850_v24 }
 0x128   : > { %2330 = vst [vmem:[%s3231_s4 + $0x280] sm:$0xff] %v2074_v22 }
 0x129   : > { %v2138_v29 = vmax.f32 %v1659_v25, 0.0  ;;  %v2202_v30 = vmax.f32 %v1851_v26, 0.0 }
 0x12a   : > { %v1277_v31 = vpop.f32.mrf.mxu0  ;;  %v1469_v32 = vpop.f32.mrf.mxu1 }
 0x12b   : > { %2394 = vst [vmem:[%s3231_s4 + $0x480] sm:$0xff] %v2138_v29  ;;  %2752 = vmatmul.msk.f32.gmra.mxu2 %vm440_vm0, %v333_v27  ;;  %2816 = vmatmul.msk.f32.gmra.mxu3 %vm440_vm0, %v397_v28  ;;  %v1278_v35 = vadd.f32 %v3217_v8, %v1277_v31  ;;  %v1470_v36 = vadd.f32 %v3217_v8, %v1469_v32  ;;  %v337_v28 = vld [vmem:[%s3080_s24 + $0x528] sm:$0xff] }
 0x12c   : > { %2458 = vst [vmem:[%s3231_s4 + $0x680] sm:$0xff] %v2202_v30  ;;  %v401_v29 = vld [vmem:[%s3080_s24 + $0x728] sm:$0xff] }
 0x12d   : > { %v2011_v37 = vmax.f32 %v1278_v35, 0.0  ;;  %v2075_v38 = vmax.f32 %v1470_v36, 0.0  ;;  %2624 = vmatmul.msk.f32.gmra.mxu0 %vm440_vm0, %v205_v33  ;;  %2688 = vmatmul.msk.f32.gmra.mxu1 %vm440_vm0, %v269_v34  ;;  %v209_v34 = vld [vmem:[%s3080_s24 + $0x128] sm:$0xff] }
 0x12e   : > { %v1661_v39 = vpop.f32.mrf.mxu2  ;;  %v1853_v40 = vpop.f32.mrf.mxu3  ;;  %v273_v35 = vld [vmem:[%s3080_s24 + $0x328] sm:$0xff] }
 0x12f   : > { %2267 = vst [vmem:[%s3231_s4 + $0x88] sm:$0xff] %v2011_v37  ;;  %v1662_v41 = vadd.f32 %v3217_v8, %v1661_v39  ;;  %v1854_v42 = vadd.f32 %v3217_v8, %v1853_v40 }
 0x130   : > { %2331 = vst [vmem:[%s3231_s4 + $0x288] sm:$0xff] %v2075_v38 }
 0x131   : > { %v2139_v45 = vmax.f32 %v1662_v41, 0.0  ;;  %v2203_v46 = vmax.f32 %v1854_v42, 0.0 }
 0x132   : > { %v1280_v47 = vpop.f32.mrf.mxu0  ;;  %v1472_v48 = vpop.f32.mrf.mxu1 }
 0x133   : > { %2395 = vst [vmem:[%s3231_s4 + $0x488] sm:$0xff] %v2139_v45  ;;  %2753 = vmatmul.msk.f32.gmra.mxu2 %vm440_vm0, %v334_v43  ;;  %2817 = vmatmul.msk.f32.gmra.mxu3 %vm440_vm0, %v398_v44  ;;  %v1281_v51 = vadd.f32 %v3217_v8, %v1280_v47  ;;  %v1473_v52 = vadd.f32 %v3217_v8, %v1472_v48  ;;  %v338_v44 = vld [vmem:[%s3080_s24 + $0x530] sm:$0xff] }
 0x134   : > { %2459 = vst [vmem:[%s3231_s4 + $0x688] sm:$0xff] %v2203_v46  ;;  %v402_v45 = vld [vmem:[%s3080_s24 + $0x730] sm:$0xff] }
 0x135   : > { %v2012_v53 = vmax.f32 %v1281_v51, 0.0  ;;  %v2076_v54 = vmax.f32 %v1473_v52, 0.0  ;;  %2625 = vmatmul.msk.f32.gmra.mxu0 %vm440_vm0, %v206_v49  ;;  %2689 = vmatmul.msk.f32.gmra.mxu1 %vm440_vm0, %v270_v50  ;;  %v210_v50 = vld [vmem:[%s3080_s24 + $0x130] sm:$0xff] }
 0x136   : > { %v1664_v55 = vpop.f32.mrf.mxu2  ;;  %v1856_v56 = vpop.f32.mrf.mxu3  ;;  %v274_v51 = vld [vmem:[%s3080_s24 + $0x330] sm:$0xff] }
 0x137   : > { %2268 = vst [vmem:[%s3231_s4 + $0x90] sm:$0xff] %v2012_v53  ;;  %v1665_v57 = vadd.f32 %v3217_v8, %v1664_v55  ;;  %v1857_v58 = vadd.f32 %v3217_v8, %v1856_v56 }
 0x138   : > { %2332 = vst [vmem:[%s3231_s4 + $0x290] sm:$0xff] %v2076_v54 }
 0x139   : > { %v2140_v61 = vmax.f32 %v1665_v57, 0.0  ;;  %v2204_v62 = vmax.f32 %v1857_v58, 0.0 }
 0x13a   : > { %v1283_v63 = vpop.f32.mrf.mxu0  ;;  %v1475_v0 = vpop.f32.mrf.mxu1 }
 0x13b   : > { %2396 = vst [vmem:[%s3231_s4 + $0x490] sm:$0xff] %v2140_v61  ;;  %2754 = vmatmul.msk.f32.gmra.mxu2 %vm440_vm0, %v335_v59  ;;  %2818 = vmatmul.msk.f32.gmra.mxu3 %vm440_vm0, %v399_v60  ;;  %v1284_v3 = vadd.f32 %v3217_v8, %v1283_v63  ;;  %v1476_v4 = vadd.f32 %v3217_v8, %v1475_v0  ;;  %v339_v60 = vld [vmem:[%s3080_s24 + $0x538] sm:$0xff] }
 0x13c   : > { %2460 = vst [vmem:[%s3231_s4 + $0x690] sm:$0xff] %v2204_v62  ;;  %v403_v61 = vld [vmem:[%s3080_s24 + $0x738] sm:$0xff] }
 0x13d   : > { %v2013_v5 = vmax.f32 %v1284_v3, 0.0  ;;  %v2077_v6 = vmax.f32 %v1476_v4, 0.0  ;;  %2626 = vmatmul.msk.f32.gmra.mxu0 %vm440_vm0, %v207_v1  ;;  %2690 = vmatmul.msk.f32.gmra.mxu1 %vm440_vm0, %v271_v2  ;;  %v211_v2 = vld [vmem:[%s3080_s24 + $0x138] sm:$0xff] }
 0x13e   : > { %v1667_v7 = vpop.f32.mrf.mxu2  ;;  %v1859_v9 = vpop.f32.mrf.mxu3  ;;  %v275_v3 = vld [vmem:[%s3080_s24 + $0x338] sm:$0xff] }
 0x13f   : > { %2269 = vst [vmem:[%s3231_s4 + $0x98] sm:$0xff] %v2013_v5  ;;  %v1668_v10 = vadd.f32 %v3217_v8, %v1667_v7  ;;  %v1860_v11 = vadd.f32 %v3217_v8, %v1859_v9 }
 0x140   : > { %2333 = vst [vmem:[%s3231_s4 + $0x298] sm:$0xff] %v2077_v6 }
 0x141   : > { %v2141_v14 = vmax.f32 %v1668_v10, 0.0  ;;  %v2205_v15 = vmax.f32 %v1860_v11, 0.0 }
 0x142   : > { %v1286_v16 = vpop.f32.mrf.mxu0  ;;  %v1478_v17 = vpop.f32.mrf.mxu1 }
 0x143   : > { %2397 = vst [vmem:[%s3231_s4 + $0x498] sm:$0xff] %v2141_v14  ;;  %2755 = vmatmul.msk.f32.gmra.mxu2 %vm440_vm0, %v336_v12  ;;  %2819 = vmatmul.msk.f32.gmra.mxu3 %vm440_vm0, %v400_v13  ;;  %v1287_v20 = vadd.f32 %v3217_v8, %v1286_v16  ;;  %v1479_v21 = vadd.f32 %v3217_v8, %v1478_v17  ;;  %v340_v13 = vld [vmem:[%s3080_s24 + $0x540] sm:$0xff] }
 0x144   : > { %2461 = vst [vmem:[%s3231_s4 + $0x698] sm:$0xff] %v2205_v15  ;;  %v404_v14 = vld [vmem:[%s3080_s24 + $0x740] sm:$0xff] }
 0x145   : > { %v2014_v22 = vmax.f32 %v1287_v20, 0.0  ;;  %v2078_v23 = vmax.f32 %v1479_v21, 0.0  ;;  %2627 = vmatmul.msk.f32.gmra.mxu0 %vm440_vm0, %v208_v18  ;;  %2691 = vmatmul.msk.f32.gmra.mxu1 %vm440_vm0, %v272_v19  ;;  %v212_v19 = vld [vmem:[%s3080_s24 + $0x140] sm:$0xff] }
 0x146   : > { %v1670_v24 = vpop.f32.mrf.mxu2  ;;  %v1862_v25 = vpop.f32.mrf.mxu3  ;;  %v276_v20 = vld [vmem:[%s3080_s24 + $0x340] sm:$0xff] }
 0x147   : > { %2270 = vst [vmem:[%s3231_s4 + $0xa0] sm:$0xff] %v2014_v22  ;;  %v1671_v26 = vadd.f32 %v3217_v8, %v1670_v24  ;;  %v1863_v27 = vadd.f32 %v3217_v8, %v1862_v25  ;;  %v3567_v8 = vld [vmem:[%s4165_s2] ss:$0 sm:$0xff] }
 0x148   : > { %2334 = vst [vmem:[%s3231_s4 + $0x2a0] sm:$0xff] %v2078_v23 }
 0x149   : > { %v2142_v30 = vmax.f32 %v1671_v26, 0.0  ;;  %v2206_v31 = vmax.f32 %v1863_v27, 0.0 }
 0x14a   : > { %v1289_v32 = vpop.f32.mrf.mxu0  ;;  %v1481_v33 = vpop.f32.mrf.mxu1 }
 0x14b   : > { %2398 = vst [vmem:[%s3231_s4 + $0x4a0] sm:$0xff] %v2142_v30  ;;  %2756 = vmatmul.msk.f32.gmra.mxu2 %vm440_vm0, %v337_v28  ;;  %2820 = vmatmul.msk.f32.gmra.mxu3 %vm440_vm0, %v401_v29  ;;  %v1290_v36 = vadd.f32 %v3567_v8, %v1289_v32  ;;  %v1482_v37 = vadd.f32 %v3567_v8, %v1481_v33  ;;  %v341_v29 = vld [vmem:[%s3080_s24 + $0x548] sm:$0xff] }
 0x14c   : > { %2462 = vst [vmem:[%s3231_s4 + $0x6a0] sm:$0xff] %v2206_v31  ;;  %v405_v30 = vld [vmem:[%s3080_s24 + $0x748] sm:$0xff] }
 0x14d   : > { %v2015_v38 = vmax.f32 %v1290_v36, 0.0  ;;  %v2079_v39 = vmax.f32 %v1482_v37, 0.0  ;;  %2628 = vmatmul.msk.f32.gmra.mxu0 %vm440_vm0, %v209_v34  ;;  %2692 = vmatmul.msk.f32.gmra.mxu1 %vm440_vm0, %v273_v35  ;;  %v213_v35 = vld [vmem:[%s3080_s24 + $0x148] sm:$0xff] }
 0x14e   : > { %v1673_v40 = vpop.f32.mrf.mxu2  ;;  %v1865_v41 = vpop.f32.mrf.mxu3  ;;  %v277_v36 = vld [vmem:[%s3080_s24 + $0x348] sm:$0xff] }
 0x14f   : > { %2271 = vst [vmem:[%s3231_s4 + $0xa8] sm:$0xff] %v2015_v38  ;;  %v1674_v42 = vadd.f32 %v3567_v8, %v1673_v40  ;;  %v1866_v43 = vadd.f32 %v3567_v8, %v1865_v41 }
 0x150   : > { %2335 = vst [vmem:[%s3231_s4 + $0x2a8] sm:$0xff] %v2079_v39 }
 0x151   : > { %v2143_v46 = vmax.f32 %v1674_v42, 0.0  ;;  %v2207_v47 = vmax.f32 %v1866_v43, 0.0 }
 0x152   : > { %v1292_v48 = vpop.f32.mrf.mxu0  ;;  %v1484_v49 = vpop.f32.mrf.mxu1 }
 0x153   : > { %2399 = vst [vmem:[%s3231_s4 + $0x4a8] sm:$0xff] %v2143_v46  ;;  %2757 = vmatmul.msk.f32.gmra.mxu2 %vm440_vm0, %v338_v44  ;;  %2821 = vmatmul.msk.f32.gmra.mxu3 %vm440_vm0, %v402_v45  ;;  %v1293_v52 = vadd.f32 %v3567_v8, %v1292_v48  ;;  %v1485_v53 = vadd.f32 %v3567_v8, %v1484_v49  ;;  %v342_v45 = vld [vmem:[%s3080_s24 + $0x550] sm:$0xff] }
 0x154   : > { %2463 = vst [vmem:[%s3231_s4 + $0x6a8] sm:$0xff] %v2207_v47  ;;  %v406_v46 = vld [vmem:[%s3080_s24 + $0x750] sm:$0xff] }
 0x155   : > { %v2016_v54 = vmax.f32 %v1293_v52, 0.0  ;;  %v2080_v55 = vmax.f32 %v1485_v53, 0.0  ;;  %2629 = vmatmul.msk.f32.gmra.mxu0 %vm440_vm0, %v210_v50  ;;  %2693 = vmatmul.msk.f32.gmra.mxu1 %vm440_vm0, %v274_v51  ;;  %v214_v51 = vld [vmem:[%s3080_s24 + $0x150] sm:$0xff] }
 0x156   : > { %v1676_v56 = vpop.f32.mrf.mxu2  ;;  %v1868_v57 = vpop.f32.mrf.mxu3  ;;  %v278_v52 = vld [vmem:[%s3080_s24 + $0x350] sm:$0xff] }
 0x157   : > { %2272 = vst [vmem:[%s3231_s4 + $0xb0] sm:$0xff] %v2016_v54  ;;  %v1677_v58 = vadd.f32 %v3567_v8, %v1676_v56  ;;  %v1869_v59 = vadd.f32 %v3567_v8, %v1868_v57 }
 0x158   : > { %2336 = vst [vmem:[%s3231_s4 + $0x2b0] sm:$0xff] %v2080_v55 }
 0x159   : > { %v2144_v62 = vmax.f32 %v1677_v58, 0.0  ;;  %v2208_v63 = vmax.f32 %v1869_v59, 0.0 }
 0x15a   : > { %v1295_v0 = vpop.f32.mrf.mxu0  ;;  %v1487_v1 = vpop.f32.mrf.mxu1 }
 0x15b   : > { %2400 = vst [vmem:[%s3231_s4 + $0x4b0] sm:$0xff] %v2144_v62  ;;  %2758 = vmatmul.msk.f32.gmra.mxu2 %vm440_vm0, %v339_v60  ;;  %2822 = vmatmul.msk.f32.gmra.mxu3 %vm440_vm0, %v403_v61  ;;  %v1296_v4 = vadd.f32 %v3567_v8, %v1295_v0  ;;  %v1488_v5 = vadd.f32 %v3567_v8, %v1487_v1  ;;  %v343_v61 = vld [vmem:[%s3080_s24 + $0x558] sm:$0xff] }
 0x15c   : > { %2464 = vst [vmem:[%s3231_s4 + $0x6b0] sm:$0xff] %v2208_v63  ;;  %v407_v62 = vld [vmem:[%s3080_s24 + $0x758] sm:$0xff] }
 0x15d   : > { %v2017_v6 = vmax.f32 %v1296_v4, 0.0  ;;  %v2081_v7 = vmax.f32 %v1488_v5, 0.0  ;;  %2630 = vmatmul.msk.f32.gmra.mxu0 %vm440_vm0, %v211_v2  ;;  %2694 = vmatmul.msk.f32.gmra.mxu1 %vm440_vm0, %v275_v3  ;;  %v215_v3 = vld [vmem:[%s3080_s24 + $0x158] sm:$0xff] }
 0x15e   : > { %v1679_v9 = vpop.f32.mrf.mxu2  ;;  %v1871_v10 = vpop.f32.mrf.mxu3  ;;  %v279_v4 = vld [vmem:[%s3080_s24 + $0x358] sm:$0xff] }
 0x15f   : > { %2273 = vst [vmem:[%s3231_s4 + $0xb8] sm:$0xff] %v2017_v6  ;;  %v1680_v11 = vadd.f32 %v3567_v8, %v1679_v9  ;;  %v1872_v12 = vadd.f32 %v3567_v8, %v1871_v10 }
 0x160   : > { %2337 = vst [vmem:[%s3231_s4 + $0x2b8] sm:$0xff] %v2081_v7 }
 0x161   : > { %v2145_v15 = vmax.f32 %v1680_v11, 0.0  ;;  %v2209_v16 = vmax.f32 %v1872_v12, 0.0 }
 0x162   : > { %v1298_v17 = vpop.f32.mrf.mxu0  ;;  %v1490_v18 = vpop.f32.mrf.mxu1 }
 0x163   : > { %2401 = vst [vmem:[%s3231_s4 + $0x4b8] sm:$0xff] %v2145_v15  ;;  %2759 = vmatmul.msk.f32.gmra.mxu2 %vm440_vm0, %v340_v13  ;;  %2823 = vmatmul.msk.f32.gmra.mxu3 %vm440_vm0, %v404_v14  ;;  %v1299_v21 = vadd.f32 %v3567_v8, %v1298_v17  ;;  %v1491_v22 = vadd.f32 %v3567_v8, %v1490_v18  ;;  %v344_v14 = vld [vmem:[%s3080_s24 + $0x560] sm:$0xff] }
 0x164   : > { %2465 = vst [vmem:[%s3231_s4 + $0x6b8] sm:$0xff] %v2209_v16  ;;  %v408_v15 = vld [vmem:[%s3080_s24 + $0x760] sm:$0xff] }
 0x165   : > { %v2018_v23 = vmax.f32 %v1299_v21, 0.0  ;;  %v2082_v24 = vmax.f32 %v1491_v22, 0.0  ;;  %2631 = vmatmul.msk.f32.gmra.mxu0 %vm440_vm0, %v212_v19  ;;  %2695 = vmatmul.msk.f32.gmra.mxu1 %vm440_vm0, %v276_v20  ;;  %v216_v20 = vld [vmem:[%s3080_s24 + $0x160] sm:$0xff] }
 0x166   : > { %v1682_v25 = vpop.f32.mrf.mxu2  ;;  %v1874_v26 = vpop.f32.mrf.mxu3  ;;  %v280_v21 = vld [vmem:[%s3080_s24 + $0x360] sm:$0xff] }
 0x167   : > { %2274 = vst [vmem:[%s3231_s4 + $0xc0] sm:$0xff] %v2018_v23  ;;  %v1683_v27 = vadd.f32 %v3567_v8, %v1682_v25  ;;  %v1875_v28 = vadd.f32 %v3567_v8, %v1874_v26 }
 0x168   : > { %2338 = vst [vmem:[%s3231_s4 + $0x2c0] sm:$0xff] %v2082_v24 }
 0x169   : > { %v2146_v31 = vmax.f32 %v1683_v27, 0.0  ;;  %v2210_v32 = vmax.f32 %v1875_v28, 0.0 }
 0x16a   : > { %v1301_v33 = vpop.f32.mrf.mxu0  ;;  %v1493_v34 = vpop.f32.mrf.mxu1 }
 0x16b   : > { %2402 = vst [vmem:[%s3231_s4 + $0x4c0] sm:$0xff] %v2146_v31  ;;  %2760 = vmatmul.msk.f32.gmra.mxu2 %vm440_vm0, %v341_v29  ;;  %2824 = vmatmul.msk.f32.gmra.mxu3 %vm440_vm0, %v405_v30  ;;  %v1302_v37 = vadd.f32 %v3567_v8, %v1301_v33  ;;  %v1494_v38 = vadd.f32 %v3567_v8, %v1493_v34  ;;  %v345_v30 = vld [vmem:[%s3080_s24 + $0x568] sm:$0xff] }
 0x16c   : > { %2466 = vst [vmem:[%s3231_s4 + $0x6c0] sm:$0xff] %v2210_v32  ;;  %v409_v31 = vld [vmem:[%s3080_s24 + $0x768] sm:$0xff] }
 0x16d   : > { %v2019_v39 = vmax.f32 %v1302_v37, 0.0  ;;  %v2083_v40 = vmax.f32 %v1494_v38, 0.0  ;;  %2632 = vmatmul.msk.f32.gmra.mxu0 %vm440_vm0, %v213_v35  ;;  %2696 = vmatmul.msk.f32.gmra.mxu1 %vm440_vm0, %v277_v36  ;;  %v217_v36 = vld [vmem:[%s3080_s24 + $0x168] sm:$0xff] }
 0x16e   : > { %v1685_v41 = vpop.f32.mrf.mxu2  ;;  %v1877_v42 = vpop.f32.mrf.mxu3  ;;  %v281_v37 = vld [vmem:[%s3080_s24 + $0x368] sm:$0xff] }
 0x16f   : > { %2275 = vst [vmem:[%s3231_s4 + $0xc8] sm:$0xff] %v2019_v39  ;;  %v1686_v43 = vadd.f32 %v3567_v8, %v1685_v41  ;;  %v1878_v44 = vadd.f32 %v3567_v8, %v1877_v42 }
 0x170   : > { %2339 = vst [vmem:[%s3231_s4 + $0x2c8] sm:$0xff] %v2083_v40 }
 0x171   : > { %v2147_v47 = vmax.f32 %v1686_v43, 0.0  ;;  %v2211_v48 = vmax.f32 %v1878_v44, 0.0 }
 0x172   : > { %v1304_v49 = vpop.f32.mrf.mxu0  ;;  %v1496_v50 = vpop.f32.mrf.mxu1 }
 0x173   : > { %2403 = vst [vmem:[%s3231_s4 + $0x4c8] sm:$0xff] %v2147_v47  ;;  %2761 = vmatmul.msk.f32.gmra.mxu2 %vm440_vm0, %v342_v45  ;;  %2825 = vmatmul.msk.f32.gmra.mxu3 %vm440_vm0, %v406_v46  ;;  %v1305_v53 = vadd.f32 %v3567_v8, %v1304_v49  ;;  %v1497_v54 = vadd.f32 %v3567_v8, %v1496_v50  ;;  %v346_v46 = vld [vmem:[%s3080_s24 + $0x570] sm:$0xff] }
 0x174   : > { %2467 = vst [vmem:[%s3231_s4 + $0x6c8] sm:$0xff] %v2211_v48  ;;  %v410_v47 = vld [vmem:[%s3080_s24 + $0x770] sm:$0xff] }
 0x175   : > { %v2020_v55 = vmax.f32 %v1305_v53, 0.0  ;;  %v2084_v56 = vmax.f32 %v1497_v54, 0.0  ;;  %2633 = vmatmul.msk.f32.gmra.mxu0 %vm440_vm0, %v214_v51  ;;  %2697 = vmatmul.msk.f32.gmra.mxu1 %vm440_vm0, %v278_v52  ;;  %v218_v52 = vld [vmem:[%s3080_s24 + $0x170] sm:$0xff] }
 0x176   : > { %v1688_v57 = vpop.f32.mrf.mxu2  ;;  %v1880_v58 = vpop.f32.mrf.mxu3  ;;  %v282_v53 = vld [vmem:[%s3080_s24 + $0x370] sm:$0xff] }
 0x177   : > { %2276 = vst [vmem:[%s3231_s4 + $0xd0] sm:$0xff] %v2020_v55  ;;  %v1689_v59 = vadd.f32 %v3567_v8, %v1688_v57  ;;  %v1881_v60 = vadd.f32 %v3567_v8, %v1880_v58 }
 0x178   : > { %2340 = vst [vmem:[%s3231_s4 + $0x2d0] sm:$0xff] %v2084_v56 }
 0x179   : > { %v2148_v63 = vmax.f32 %v1689_v59, 0.0  ;;  %v2212_v0 = vmax.f32 %v1881_v60, 0.0 }
 0x17a   : > { %v1307_v1 = vpop.f32.mrf.mxu0  ;;  %v1499_v2 = vpop.f32.mrf.mxu1 }
 0x17b   : > { %2404 = vst [vmem:[%s3231_s4 + $0x4d0] sm:$0xff] %v2148_v63  ;;  %2762 = vmatmul.msk.f32.gmra.mxu2 %vm440_vm0, %v343_v61  ;;  %2826 = vmatmul.msk.f32.gmra.mxu3 %vm440_vm0, %v407_v62  ;;  %v1308_v5 = vadd.f32 %v3567_v8, %v1307_v1  ;;  %v1500_v6 = vadd.f32 %v3567_v8, %v1499_v2  ;;  %v347_v62 = vld [vmem:[%s3080_s24 + $0x578] sm:$0xff] }
 0x17c   : > { %2468 = vst [vmem:[%s3231_s4 + $0x6d0] sm:$0xff] %v2212_v0  ;;  %v411_v63 = vld [vmem:[%s3080_s24 + $0x778] sm:$0xff] }
 0x17d   : > { %v2021_v7 = vmax.f32 %v1308_v5, 0.0  ;;  %v2085_v9 = vmax.f32 %v1500_v6, 0.0  ;;  %2634 = vmatmul.msk.f32.gmra.mxu0 %vm440_vm0, %v215_v3  ;;  %2698 = vmatmul.msk.f32.gmra.mxu1 %vm440_vm0, %v279_v4  ;;  %v219_v4 = vld [vmem:[%s3080_s24 + $0x178] sm:$0xff] }
 0x17e   : > { %v1691_v10 = vpop.f32.mrf.mxu2  ;;  %v1883_v11 = vpop.f32.mrf.mxu3  ;;  %v283_v5 = vld [vmem:[%s3080_s24 + $0x378] sm:$0xff] }
 0x17f   : > { %2277 = vst [vmem:[%s3231_s4 + $0xd8] sm:$0xff] %v2021_v7  ;;  %v1692_v12 = vadd.f32 %v3567_v8, %v1691_v10  ;;  %v1884_v13 = vadd.f32 %v3567_v8, %v1883_v11 }
 0x180   : > { %2341 = vst [vmem:[%s3231_s4 + $0x2d8] sm:$0xff] %v2085_v9 }
 0x181   : > { %v2149_v16 = vmax.f32 %v1692_v12, 0.0  ;;  %v2213_v17 = vmax.f32 %v1884_v13, 0.0 }
 0x182   : > { %v1310_v18 = vpop.f32.mrf.mxu0  ;;  %v1502_v19 = vpop.f32.mrf.mxu1 }
 0x183   : > { %2405 = vst [vmem:[%s3231_s4 + $0x4d8] sm:$0xff] %v2149_v16  ;;  %2763 = vmatmul.msk.f32.gmra.mxu2 %vm440_vm0, %v344_v14  ;;  %2827 = vmatmul.msk.f32.gmra.mxu3 %vm440_vm0, %v408_v15  ;;  %v1311_v22 = vadd.f32 %v3567_v8, %v1310_v18  ;;  %v1503_v23 = vadd.f32 %v3567_v8, %v1502_v19  ;;  %v348_v15 = vld [vmem:[%s3080_s24 + $0x580] sm:$0xff] }
 0x184   : > { %2469 = vst [vmem:[%s3231_s4 + $0x6d8] sm:$0xff] %v2213_v17  ;;  %v412_v16 = vld [vmem:[%s3080_s24 + $0x780] sm:$0xff] }
 0x185   : > { %v2022_v24 = vmax.f32 %v1311_v22, 0.0  ;;  %v2086_v25 = vmax.f32 %v1503_v23, 0.0  ;;  %2635 = vmatmul.msk.f32.gmra.mxu0 %vm440_vm0, %v216_v20  ;;  %2699 = vmatmul.msk.f32.gmra.mxu1 %vm440_vm0, %v280_v21  ;;  %v220_v21 = vld [vmem:[%s3080_s24 + $0x180] sm:$0xff] }
 0x186   : > { %v1694_v26 = vpop.f32.mrf.mxu2  ;;  %v1886_v27 = vpop.f32.mrf.mxu3  ;;  %v284_v22 = vld [vmem:[%s3080_s24 + $0x380] sm:$0xff] }
 0x187   : > { %2278 = vst [vmem:[%s3231_s4 + $0xe0] sm:$0xff] %v2022_v24  ;;  %v1695_v28 = vadd.f32 %v3567_v8, %v1694_v26  ;;  %v1887_v29 = vadd.f32 %v3567_v8, %v1886_v27 }
 0x188   : > { %2342 = vst [vmem:[%s3231_s4 + $0x2e0] sm:$0xff] %v2086_v25 }
 0x189   : > { %v2150_v32 = vmax.f32 %v1695_v28, 0.0  ;;  %v2214_v33 = vmax.f32 %v1887_v29, 0.0 }
 0x18a   : > { %v1313_v34 = vpop.f32.mrf.mxu0  ;;  %v1505_v35 = vpop.f32.mrf.mxu1 }
 0x18b   : > { %2406 = vst [vmem:[%s3231_s4 + $0x4e0] sm:$0xff] %v2150_v32  ;;  %2764 = vmatmul.msk.f32.gmra.mxu2 %vm440_vm0, %v345_v30  ;;  %2828 = vmatmul.msk.f32.gmra.mxu3 %vm440_vm0, %v409_v31  ;;  %v1314_v38 = vadd.f32 %v3567_v8, %v1313_v34  ;;  %v1506_v39 = vadd.f32 %v3567_v8, %v1505_v35  ;;  %v349_v31 = vld [vmem:[%s3080_s24 + $0x588] sm:$0xff] }
 0x18c   : > { %2470 = vst [vmem:[%s3231_s4 + $0x6e0] sm:$0xff] %v2214_v33  ;;  %v413_v32 = vld [vmem:[%s3080_s24 + $0x788] sm:$0xff] }
 0x18d   : > { %v2023_v40 = vmax.f32 %v1314_v38, 0.0  ;;  %v2087_v41 = vmax.f32 %v1506_v39, 0.0  ;;  %2636 = vmatmul.msk.f32.gmra.mxu0 %vm440_vm0, %v217_v36  ;;  %2700 = vmatmul.msk.f32.gmra.mxu1 %vm440_vm0, %v281_v37  ;;  %v221_v37 = vld [vmem:[%s3080_s24 + $0x188] sm:$0xff] }
 0x18e   : > { %v1697_v42 = vpop.f32.mrf.mxu2  ;;  %v1889_v43 = vpop.f32.mrf.mxu3  ;;  %v285_v38 = vld [vmem:[%s3080_s24 + $0x388] sm:$0xff] }
 0x18f   : > { %2279 = vst [vmem:[%s3231_s4 + $0xe8] sm:$0xff] %v2023_v40  ;;  %v1698_v44 = vadd.f32 %v3567_v8, %v1697_v42  ;;  %v1890_v45 = vadd.f32 %v3567_v8, %v1889_v43 }
 0x190   : > { %2343 = vst [vmem:[%s3231_s4 + $0x2e8] sm:$0xff] %v2087_v41 }
 0x191   : > { %v2151_v48 = vmax.f32 %v1698_v44, 0.0  ;;  %v2215_v49 = vmax.f32 %v1890_v45, 0.0 }
 0x192   : > { %v1316_v50 = vpop.f32.mrf.mxu0  ;;  %v1508_v51 = vpop.f32.mrf.mxu1 }
 0x193   : > { %2407 = vst [vmem:[%s3231_s4 + $0x4e8] sm:$0xff] %v2151_v48  ;;  %2765 = vmatmul.msk.f32.gmra.mxu2 %vm440_vm0, %v346_v46  ;;  %2829 = vmatmul.msk.f32.gmra.mxu3 %vm440_vm0, %v410_v47  ;;  %v1317_v54 = vadd.f32 %v3567_v8, %v1316_v50  ;;  %v1509_v55 = vadd.f32 %v3567_v8, %v1508_v51  ;;  %v350_v47 = vld [vmem:[%s3080_s24 + $0x590] sm:$0xff] }
 0x194   : > { %2471 = vst [vmem:[%s3231_s4 + $0x6e8] sm:$0xff] %v2215_v49  ;;  %v414_v48 = vld [vmem:[%s3080_s24 + $0x790] sm:$0xff] }
 0x195   : > { %v2024_v56 = vmax.f32 %v1317_v54, 0.0  ;;  %v2088_v57 = vmax.f32 %v1509_v55, 0.0  ;;  %2637 = vmatmul.msk.f32.gmra.mxu0 %vm440_vm0, %v218_v52  ;;  %2701 = vmatmul.msk.f32.gmra.mxu1 %vm440_vm0, %v282_v53  ;;  %v222_v53 = vld [vmem:[%s3080_s24 + $0x190] sm:$0xff] }
 0x196   : > { %v1700_v58 = vpop.f32.mrf.mxu2  ;;  %v1892_v59 = vpop.f32.mrf.mxu3  ;;  %v286_v54 = vld [vmem:[%s3080_s24 + $0x390] sm:$0xff] }
 0x197   : > { %2280 = vst [vmem:[%s3231_s4 + $0xf0] sm:$0xff] %v2024_v56  ;;  %v1701_v60 = vadd.f32 %v3567_v8, %v1700_v58  ;;  %v1893_v61 = vadd.f32 %v3567_v8, %v1892_v59 }
 0x198   : > { %2344 = vst [vmem:[%s3231_s4 + $0x2f0] sm:$0xff] %v2088_v57 }
 0x199   : > { %v2152_v0 = vmax.f32 %v1701_v60, 0.0  ;;  %v2216_v1 = vmax.f32 %v1893_v61, 0.0 }
 0x19a   : > { %v1319_v2 = vpop.f32.mrf.mxu0  ;;  %v1511_v3 = vpop.f32.mrf.mxu1 }
 0x19b   : > { %2408 = vst [vmem:[%s3231_s4 + $0x4f0] sm:$0xff] %v2152_v0  ;;  %2766 = vmatmul.msk.f32.gmra.mxu2 %vm440_vm0, %v347_v62  ;;  %2830 = vmatmul.msk.f32.gmra.mxu3 %vm440_vm0, %v411_v63  ;;  %v1320_v6 = vadd.f32 %v3567_v8, %v1319_v2  ;;  %v1512_v7 = vadd.f32 %v3567_v8, %v1511_v3  ;;  %v351_v63 = vld [vmem:[%s3080_s24 + $0x598] sm:$0xff] }
 0x19c   : > { %2472 = vst [vmem:[%s3231_s4 + $0x6f0] sm:$0xff] %v2216_v1  ;;  %v415_v0 = vld [vmem:[%s3080_s24 + $0x798] sm:$0xff] }
 0x19d   : > { %v2025_v9 = vmax.f32 %v1320_v6, 0.0  ;;  %v2089_v10 = vmax.f32 %v1512_v7, 0.0  ;;  %2638 = vmatmul.msk.f32.gmra.mxu0 %vm440_vm0, %v219_v4  ;;  %2702 = vmatmul.msk.f32.gmra.mxu1 %vm440_vm0, %v283_v5  ;;  %v223_v5 = vld [vmem:[%s3080_s24 + $0x198] sm:$0xff] }
 0x19e   : > { %v1703_v11 = vpop.f32.mrf.mxu2  ;;  %v1895_v12 = vpop.f32.mrf.mxu3  ;;  %v287_v6 = vld [vmem:[%s3080_s24 + $0x398] sm:$0xff] }
 0x19f   : > { %2281 = vst [vmem:[%s3231_s4 + $0xf8] sm:$0xff] %v2025_v9  ;;  %v1704_v13 = vadd.f32 %v3567_v8, %v1703_v11  ;;  %v1896_v14 = vadd.f32 %v3567_v8, %v1895_v12 }
 0x1a0   : > { %2345 = vst [vmem:[%s3231_s4 + $0x2f8] sm:$0xff] %v2089_v10 }
 0x1a1   : > { %v2153_v17 = vmax.f32 %v1704_v13, 0.0  ;;  %v2217_v18 = vmax.f32 %v1896_v14, 0.0 }
 0x1a2   : > { %v1322_v19 = vpop.f32.mrf.mxu0  ;;  %v1514_v20 = vpop.f32.mrf.mxu1 }
 0x1a3   : > { %2409 = vst [vmem:[%s3231_s4 + $0x4f8] sm:$0xff] %v2153_v17  ;;  %2767 = vmatmul.msk.f32.gmra.mxu2 %vm440_vm0, %v348_v15  ;;  %2831 = vmatmul.msk.f32.gmra.mxu3 %vm440_vm0, %v412_v16  ;;  %v1323_v23 = vadd.f32 %v3567_v8, %v1322_v19  ;;  %v1515_v24 = vadd.f32 %v3567_v8, %v1514_v20  ;;  %v352_v16 = vld [vmem:[%s3080_s24 + $0x5a0] sm:$0xff] }
 0x1a4   : > { %2473 = vst [vmem:[%s3231_s4 + $0x6f8] sm:$0xff] %v2217_v18  ;;  %v416_v17 = vld [vmem:[%s3080_s24 + $0x7a0] sm:$0xff] }
 0x1a5   : > { %v2026_v25 = vmax.f32 %v1323_v23, 0.0  ;;  %v2090_v26 = vmax.f32 %v1515_v24, 0.0  ;;  %2639 = vmatmul.msk.f32.gmra.mxu0 %vm440_vm0, %v220_v21  ;;  %2703 = vmatmul.msk.f32.gmra.mxu1 %vm440_vm0, %v284_v22  ;;  %v224_v22 = vld [vmem:[%s3080_s24 + $0x1a0] sm:$0xff] }
 0x1a6   : > { %v1706_v27 = vpop.f32.mrf.mxu2  ;;  %v1898_v28 = vpop.f32.mrf.mxu3  ;;  %v288_v23 = vld [vmem:[%s3080_s24 + $0x3a0] sm:$0xff] }
 0x1a7   : > { %2282 = vst [vmem:[%s3231_s4 + $0x100] sm:$0xff] %v2026_v25  ;;  %v1707_v29 = vadd.f32 %v3567_v8, %v1706_v27  ;;  %v1899_v30 = vadd.f32 %v3567_v8, %v1898_v28 }
 0x1a8   : > { %2346 = vst [vmem:[%s3231_s4 + $0x300] sm:$0xff] %v2090_v26 }
 0x1a9   : > { %v2154_v33 = vmax.f32 %v1707_v29, 0.0  ;;  %v2218_v34 = vmax.f32 %v1899_v30, 0.0 }
 0x1aa   : > { %v1325_v35 = vpop.f32.mrf.mxu0  ;;  %v1517_v36 = vpop.f32.mrf.mxu1 }
 0x1ab   : > { %2410 = vst [vmem:[%s3231_s4 + $0x500] sm:$0xff] %v2154_v33  ;;  %2768 = vmatmul.msk.f32.gmra.mxu2 %vm440_vm0, %v349_v31  ;;  %2832 = vmatmul.msk.f32.gmra.mxu3 %vm440_vm0, %v413_v32  ;;  %v1326_v39 = vadd.f32 %v3567_v8, %v1325_v35  ;;  %v1518_v40 = vadd.f32 %v3567_v8, %v1517_v36  ;;  %v353_v32 = vld [vmem:[%s3080_s24 + $0x5a8] sm:$0xff] }
 0x1ac   : > { %2474 = vst [vmem:[%s3231_s4 + $0x700] sm:$0xff] %v2218_v34  ;;  %v417_v33 = vld [vmem:[%s3080_s24 + $0x7a8] sm:$0xff] }
 0x1ad   : > { %v2027_v41 = vmax.f32 %v1326_v39, 0.0  ;;  %v2091_v42 = vmax.f32 %v1518_v40, 0.0  ;;  %2640 = vmatmul.msk.f32.gmra.mxu0 %vm440_vm0, %v221_v37  ;;  %2704 = vmatmul.msk.f32.gmra.mxu1 %vm440_vm0, %v285_v38  ;;  %v225_v38 = vld [vmem:[%s3080_s24 + $0x1a8] sm:$0xff] }
 0x1ae   : > { %v1709_v43 = vpop.f32.mrf.mxu2  ;;  %v1901_v44 = vpop.f32.mrf.mxu3  ;;  %v289_v39 = vld [vmem:[%s3080_s24 + $0x3a8] sm:$0xff] }
 0x1af   : > { %2283 = vst [vmem:[%s3231_s4 + $0x108] sm:$0xff] %v2027_v41  ;;  %v1710_v45 = vadd.f32 %v3567_v8, %v1709_v43  ;;  %v1902_v46 = vadd.f32 %v3567_v8, %v1901_v44 }
 0x1b0   : > { %2347 = vst [vmem:[%s3231_s4 + $0x308] sm:$0xff] %v2091_v42 }
 0x1b1   : > { %v2155_v49 = vmax.f32 %v1710_v45, 0.0  ;;  %v2219_v50 = vmax.f32 %v1902_v46, 0.0 }
 0x1b2   : > { %v1328_v51 = vpop.f32.mrf.mxu0  ;;  %v1520_v52 = vpop.f32.mrf.mxu1 }
 0x1b3   : > { %2411 = vst [vmem:[%s3231_s4 + $0x508] sm:$0xff] %v2155_v49  ;;  %2769 = vmatmul.msk.f32.gmra.mxu2 %vm440_vm0, %v350_v47  ;;  %2833 = vmatmul.msk.f32.gmra.mxu3 %vm440_vm0, %v414_v48  ;;  %v1329_v55 = vadd.f32 %v3567_v8, %v1328_v51  ;;  %v1521_v56 = vadd.f32 %v3567_v8, %v1520_v52  ;;  %v354_v48 = vld [vmem:[%s3080_s24 + $0x5b0] sm:$0xff] }
 0x1b4   : > { %2475 = vst [vmem:[%s3231_s4 + $0x708] sm:$0xff] %v2219_v50  ;;  %v418_v49 = vld [vmem:[%s3080_s24 + $0x7b0] sm:$0xff] }
 0x1b5   : > { %v2028_v57 = vmax.f32 %v1329_v55, 0.0  ;;  %v2092_v58 = vmax.f32 %v1521_v56, 0.0  ;;  %2641 = vmatmul.msk.f32.gmra.mxu0 %vm440_vm0, %v222_v53  ;;  %2705 = vmatmul.msk.f32.gmra.mxu1 %vm440_vm0, %v286_v54  ;;  %v226_v54 = vld [vmem:[%s3080_s24 + $0x1b0] sm:$0xff] }
 0x1b6   : > { %v1712_v59 = vpop.f32.mrf.mxu2  ;;  %v1904_v60 = vpop.f32.mrf.mxu3  ;;  %v290_v55 = vld [vmem:[%s3080_s24 + $0x3b0] sm:$0xff] }
 0x1b7   : > { %2284 = vst [vmem:[%s3231_s4 + $0x110] sm:$0xff] %v2028_v57  ;;  %v1713_v61 = vadd.f32 %v3567_v8, %v1712_v59  ;;  %v1905_v62 = vadd.f32 %v3567_v8, %v1904_v60 }
 0x1b8   : > { %2348 = vst [vmem:[%s3231_s4 + $0x310] sm:$0xff] %v2092_v58 }
 0x1b9   : > { %v2156_v1 = vmax.f32 %v1713_v61, 0.0  ;;  %v2220_v2 = vmax.f32 %v1905_v62, 0.0 }
 0x1ba   : > { %v1331_v3 = vpop.f32.mrf.mxu0  ;;  %v1523_v4 = vpop.f32.mrf.mxu1 }
 0x1bb   : > { %2412 = vst [vmem:[%s3231_s4 + $0x510] sm:$0xff] %v2156_v1  ;;  %2770 = vmatmul.msk.f32.gmra.mxu2 %vm440_vm0, %v351_v63  ;;  %2834 = vmatmul.msk.f32.gmra.mxu3 %vm440_vm0, %v415_v0  ;;  %v1332_v7 = vadd.f32 %v3567_v8, %v1331_v3  ;;  %v1524_v9 = vadd.f32 %v3567_v8, %v1523_v4  ;;  %v355_v0 = vld [vmem:[%s3080_s24 + $0x5b8] sm:$0xff] }
 0x1bc   : > { %2476 = vst [vmem:[%s3231_s4 + $0x710] sm:$0xff] %v2220_v2  ;;  %v419_v1 = vld [vmem:[%s3080_s24 + $0x7b8] sm:$0xff] }
 0x1bd   : > { %v2029_v10 = vmax.f32 %v1332_v7, 0.0  ;;  %v2093_v11 = vmax.f32 %v1524_v9, 0.0  ;;  %2642 = vmatmul.msk.f32.gmra.mxu0 %vm440_vm0, %v223_v5  ;;  %2706 = vmatmul.msk.f32.gmra.mxu1 %vm440_vm0, %v287_v6  ;;  %v227_v6 = vld [vmem:[%s3080_s24 + $0x1b8] sm:$0xff] }
 0x1be   : > { %v1715_v12 = vpop.f32.mrf.mxu2  ;;  %v1907_v13 = vpop.f32.mrf.mxu3  ;;  %v291_v7 = vld [vmem:[%s3080_s24 + $0x3b8] sm:$0xff] }
 0x1bf   : > { %2285 = vst [vmem:[%s3231_s4 + $0x118] sm:$0xff] %v2029_v10  ;;  %v1716_v14 = vadd.f32 %v3567_v8, %v1715_v12  ;;  %v1908_v15 = vadd.f32 %v3567_v8, %v1907_v13 }
 0x1c0   : > { %2349 = vst [vmem:[%s3231_s4 + $0x318] sm:$0xff] %v2093_v11 }
 0x1c1   : > { %v2157_v18 = vmax.f32 %v1716_v14, 0.0  ;;  %v2221_v19 = vmax.f32 %v1908_v15, 0.0 }
 0x1c2   : > { %v1334_v20 = vpop.f32.mrf.mxu0  ;;  %v1526_v21 = vpop.f32.mrf.mxu1 }
 0x1c3   : > { %2413 = vst [vmem:[%s3231_s4 + $0x518] sm:$0xff] %v2157_v18  ;;  %2771 = vmatmul.msk.f32.gmra.mxu2 %vm440_vm0, %v352_v16  ;;  %2835 = vmatmul.msk.f32.gmra.mxu3 %vm440_vm0, %v416_v17  ;;  %v1335_v24 = vadd.f32 %v3567_v8, %v1334_v20  ;;  %v1527_v25 = vadd.f32 %v3567_v8, %v1526_v21  ;;  %v356_v17 = vld [vmem:[%s3080_s24 + $0x5c0] sm:$0xff] }
 0x1c4   : > { %2477 = vst [vmem:[%s3231_s4 + $0x718] sm:$0xff] %v2221_v19  ;;  %v420_v18 = vld [vmem:[%s3080_s24 + $0x7c0] sm:$0xff] }
 0x1c5   : > { %v2030_v26 = vmax.f32 %v1335_v24, 0.0  ;;  %v2094_v27 = vmax.f32 %v1527_v25, 0.0  ;;  %2643 = vmatmul.msk.f32.gmra.mxu0 %vm440_vm0, %v224_v22  ;;  %2707 = vmatmul.msk.f32.gmra.mxu1 %vm440_vm0, %v288_v23  ;;  %v228_v23 = vld [vmem:[%s3080_s24 + $0x1c0] sm:$0xff] }
 0x1c6   : > { %v1718_v28 = vpop.f32.mrf.mxu2  ;;  %v1910_v29 = vpop.f32.mrf.mxu3  ;;  %v292_v24 = vld [vmem:[%s3080_s24 + $0x3c0] sm:$0xff] }
 0x1c7   : > { %2286 = vst [vmem:[%s3231_s4 + $0x120] sm:$0xff] %v2030_v26  ;;  %v1719_v30 = vadd.f32 %v3567_v8, %v1718_v28  ;;  %v1911_v31 = vadd.f32 %v3567_v8, %v1910_v29 }
 0x1c8   : > { %2350 = vst [vmem:[%s3231_s4 + $0x320] sm:$0xff] %v2094_v27 }
 0x1c9   : > { %v2158_v34 = vmax.f32 %v1719_v30, 0.0  ;;  %v2222_v35 = vmax.f32 %v1911_v31, 0.0 }
 0x1ca   : > { %v1337_v36 = vpop.f32.mrf.mxu0  ;;  %v1529_v37 = vpop.f32.mrf.mxu1 }
 0x1cb   : > { %2414 = vst [vmem:[%s3231_s4 + $0x520] sm:$0xff] %v2158_v34  ;;  %2772 = vmatmul.msk.f32.gmra.mxu2 %vm440_vm0, %v353_v32  ;;  %2836 = vmatmul.msk.f32.gmra.mxu3 %vm440_vm0, %v417_v33  ;;  %v1338_v40 = vadd.f32 %v3567_v8, %v1337_v36  ;;  %v1530_v41 = vadd.f32 %v3567_v8, %v1529_v37  ;;  %v357_v33 = vld [vmem:[%s3080_s24 + $0x5c8] sm:$0xff] }
 0x1cc   : > { %2478 = vst [vmem:[%s3231_s4 + $0x720] sm:$0xff] %v2222_v35  ;;  %v421_v34 = vld [vmem:[%s3080_s24 + $0x7c8] sm:$0xff] }
 0x1cd   : > { %v2031_v42 = vmax.f32 %v1338_v40, 0.0  ;;  %v2095_v43 = vmax.f32 %v1530_v41, 0.0  ;;  %2644 = vmatmul.msk.f32.gmra.mxu0 %vm440_vm0, %v225_v38  ;;  %2708 = vmatmul.msk.f32.gmra.mxu1 %vm440_vm0, %v289_v39  ;;  %v229_v39 = vld [vmem:[%s3080_s24 + $0x1c8] sm:$0xff] }
 0x1ce   : > { %v1721_v44 = vpop.f32.mrf.mxu2  ;;  %v1913_v45 = vpop.f32.mrf.mxu3  ;;  %v293_v40 = vld [vmem:[%s3080_s24 + $0x3c8] sm:$0xff] }
 0x1cf   : > { %2287 = vst [vmem:[%s3231_s4 + $0x128] sm:$0xff] %v2031_v42  ;;  %v1722_v46 = vadd.f32 %v3567_v8, %v1721_v44  ;;  %v1914_v47 = vadd.f32 %v3567_v8, %v1913_v45 }
 0x1d0   : > { %2351 = vst [vmem:[%s3231_s4 + $0x328] sm:$0xff] %v2095_v43 }
 0x1d1   : > { %v2159_v50 = vmax.f32 %v1722_v46, 0.0  ;;  %v2223_v51 = vmax.f32 %v1914_v47, 0.0 }
 0x1d2   : > { %v1340_v52 = vpop.f32.mrf.mxu0  ;;  %v1532_v53 = vpop.f32.mrf.mxu1 }
 0x1d3   : > { %2415 = vst [vmem:[%s3231_s4 + $0x528] sm:$0xff] %v2159_v50  ;;  %2773 = vmatmul.msk.f32.gmra.mxu2 %vm440_vm0, %v354_v48  ;;  %2837 = vmatmul.msk.f32.gmra.mxu3 %vm440_vm0, %v418_v49  ;;  %v1341_v56 = vadd.f32 %v3567_v8, %v1340_v52  ;;  %v1533_v57 = vadd.f32 %v3567_v8, %v1532_v53  ;;  %v358_v49 = vld [vmem:[%s3080_s24 + $0x5d0] sm:$0xff] }
 0x1d4   : > { %2479 = vst [vmem:[%s3231_s4 + $0x728] sm:$0xff] %v2223_v51  ;;  %v422_v50 = vld [vmem:[%s3080_s24 + $0x7d0] sm:$0xff] }
 0x1d5   : > { %v2032_v58 = vmax.f32 %v1341_v56, 0.0  ;;  %v2096_v59 = vmax.f32 %v1533_v57, 0.0  ;;  %2645 = vmatmul.msk.f32.gmra.mxu0 %vm440_vm0, %v226_v54  ;;  %2709 = vmatmul.msk.f32.gmra.mxu1 %vm440_vm0, %v290_v55  ;;  %v230_v55 = vld [vmem:[%s3080_s24 + $0x1d0] sm:$0xff] }
 0x1d6   : > { %v1724_v60 = vpop.f32.mrf.mxu2  ;;  %v1916_v61 = vpop.f32.mrf.mxu3  ;;  %v294_v56 = vld [vmem:[%s3080_s24 + $0x3d0] sm:$0xff] }
 0x1d7   : > { %2288 = vst [vmem:[%s3231_s4 + $0x130] sm:$0xff] %v2032_v58  ;;  %v1725_v62 = vadd.f32 %v3567_v8, %v1724_v60  ;;  %v1917_v63 = vadd.f32 %v3567_v8, %v1916_v61 }
 0x1d8   : > { %2352 = vst [vmem:[%s3231_s4 + $0x330] sm:$0xff] %v2096_v59 }
 0x1d9   : > { %v2160_v2 = vmax.f32 %v1725_v62, 0.0  ;;  %v2224_v3 = vmax.f32 %v1917_v63, 0.0  ;;  %v3914_v63 = vld [vmem:[%s4165_s2] ss:$0 sm:$0xff] }
 0x1da   : > { %v1343_v4 = vpop.f32.mrf.mxu0  ;;  %v1535_v5 = vpop.f32.mrf.mxu1 }
 0x1db   : > { %2416 = vst [vmem:[%s3231_s4 + $0x530] sm:$0xff] %v2160_v2  ;;  %2774 = vmatmul.msk.f32.gmra.mxu2 %vm440_vm0, %v355_v0  ;;  %2838 = vmatmul.msk.f32.gmra.mxu3 %vm440_vm0, %v419_v1  ;;  %v1344_v9 = vadd.f32 %v3567_v8, %v1343_v4  ;;  %v1536_v10 = vadd.f32 %v3567_v8, %v1535_v5  ;;  %v359_v1 = vld [vmem:[%s3080_s24 + $0x5d8] sm:$0xff] }
 0x1dc   : > { %2480 = vst [vmem:[%s3231_s4 + $0x730] sm:$0xff] %v2224_v3  ;;  %v423_v2 = vld [vmem:[%s3080_s24 + $0x7d8] sm:$0xff] }
 0x1dd   : > { %v2033_v11 = vmax.f32 %v1344_v9, 0.0  ;;  %v2097_v12 = vmax.f32 %v1536_v10, 0.0  ;;  %2646 = vmatmul.msk.f32.gmra.mxu0 %vm440_vm0, %v227_v6  ;;  %2710 = vmatmul.msk.f32.gmra.mxu1 %vm440_vm0, %v291_v7  ;;  %v231_v7 = vld [vmem:[%s3080_s24 + $0x1d8] sm:$0xff] }
 0x1de   : > { %v1727_v13 = vpop.f32.mrf.mxu2  ;;  %v1919_v14 = vpop.f32.mrf.mxu3  ;;  %v295_v9 = vld [vmem:[%s3080_s24 + $0x3d8] sm:$0xff] }
 0x1df   : > { %2289 = vst [vmem:[%s3231_s4 + $0x138] sm:$0xff] %v2033_v11  ;;  %v1728_v15 = vadd.f32 %v3567_v8, %v1727_v13  ;;  %v1920_v16 = vadd.f32 %v3567_v8, %v1919_v14 }
 0x1e0   : > { %2353 = vst [vmem:[%s3231_s4 + $0x338] sm:$0xff] %v2097_v12 }
 0x1e1   : > { %v2161_v19 = vmax.f32 %v1728_v15, 0.0  ;;  %v2225_v20 = vmax.f32 %v1920_v16, 0.0 }
 0x1e2   : > { %v1346_v21 = vpop.f32.mrf.mxu0  ;;  %v1538_v22 = vpop.f32.mrf.mxu1 }
 0x1e3   : > { %2417 = vst [vmem:[%s3231_s4 + $0x538] sm:$0xff] %v2161_v19  ;;  %2775 = vmatmul.msk.f32.gmra.mxu2 %vm440_vm0, %v356_v17  ;;  %2839 = vmatmul.msk.f32.gmra.mxu3 %vm440_vm0, %v420_v18  ;;  %v1347_v25 = vadd.f32 %v3567_v8, %v1346_v21  ;;  %v1539_v26 = vadd.f32 %v3567_v8, %v1538_v22  ;;  %v360_v18 = vld [vmem:[%s3080_s24 + $0x5e0] sm:$0xff] }
 0x1e4   : > { %2481 = vst [vmem:[%s3231_s4 + $0x738] sm:$0xff] %v2225_v20  ;;  %v424_v19 = vld [vmem:[%s3080_s24 + $0x7e0] sm:$0xff] }
 0x1e5   : > { %v2034_v27 = vmax.f32 %v1347_v25, 0.0  ;;  %v2098_v28 = vmax.f32 %v1539_v26, 0.0  ;;  %2647 = vmatmul.msk.f32.gmra.mxu0 %vm440_vm0, %v228_v23  ;;  %2711 = vmatmul.msk.f32.gmra.mxu1 %vm440_vm0, %v292_v24  ;;  %v232_v24 = vld [vmem:[%s3080_s24 + $0x1e0] sm:$0xff] }
 0x1e6   : > { %v1730_v29 = vpop.f32.mrf.mxu2  ;;  %v1922_v30 = vpop.f32.mrf.mxu3  ;;  %v296_v25 = vld [vmem:[%s3080_s24 + $0x3e0] sm:$0xff] }
 0x1e7   : > { %2290 = vst [vmem:[%s3231_s4 + $0x140] sm:$0xff] %v2034_v27  ;;  %v1731_v31 = vadd.f32 %v3567_v8, %v1730_v29  ;;  %v1923_v32 = vadd.f32 %v3567_v8, %v1922_v30 }
 0x1e8   : > { %2354 = vst [vmem:[%s3231_s4 + $0x340] sm:$0xff] %v2098_v28 }
 0x1e9   : > { %v2162_v35 = vmax.f32 %v1731_v31, 0.0  ;;  %v2226_v36 = vmax.f32 %v1923_v32, 0.0 }
 0x1ea   : > { %v1349_v37 = vpop.f32.mrf.mxu0  ;;  %v1541_v38 = vpop.f32.mrf.mxu1 }
 0x1eb   : > { %2418 = vst [vmem:[%s3231_s4 + $0x540] sm:$0xff] %v2162_v35  ;;  %2776 = vmatmul.msk.f32.gmra.mxu2 %vm440_vm0, %v357_v33  ;;  %2840 = vmatmul.msk.f32.gmra.mxu3 %vm440_vm0, %v421_v34  ;;  %v1350_v41 = vadd.f32 %v3567_v8, %v1349_v37  ;;  %v1542_v42 = vadd.f32 %v3567_v8, %v1541_v38  ;;  %v361_v34 = vld [vmem:[%s3080_s24 + $0x5e8] sm:$0xff] }
 0x1ec   : > { %2482 = vst [vmem:[%s3231_s4 + $0x740] sm:$0xff] %v2226_v36  ;;  %v425_v35 = vld [vmem:[%s3080_s24 + $0x7e8] sm:$0xff] }
 0x1ed   : > { %v2035_v43 = vmax.f32 %v1350_v41, 0.0  ;;  %v2099_v44 = vmax.f32 %v1542_v42, 0.0  ;;  %2648 = vmatmul.msk.f32.gmra.mxu0 %vm440_vm0, %v229_v39  ;;  %2712 = vmatmul.msk.f32.gmra.mxu1 %vm440_vm0, %v293_v40  ;;  %v233_v40 = vld [vmem:[%s3080_s24 + $0x1e8] sm:$0xff] }
 0x1ee   : > { %v1733_v45 = vpop.f32.mrf.mxu2  ;;  %v1925_v46 = vpop.f32.mrf.mxu3  ;;  %v297_v41 = vld [vmem:[%s3080_s24 + $0x3e8] sm:$0xff] }
 0x1ef   : > { %2291 = vst [vmem:[%s3231_s4 + $0x148] sm:$0xff] %v2035_v43  ;;  %v1734_v47 = vadd.f32 %v3567_v8, %v1733_v45  ;;  %v1926_v48 = vadd.f32 %v3567_v8, %v1925_v46 }
 0x1f0   : > { %2355 = vst [vmem:[%s3231_s4 + $0x348] sm:$0xff] %v2099_v44 }
 0x1f1   : > { %v2163_v51 = vmax.f32 %v1734_v47, 0.0  ;;  %v2227_v52 = vmax.f32 %v1926_v48, 0.0 }
 0x1f2   : > { %v1352_v53 = vpop.f32.mrf.mxu0  ;;  %v1544_v54 = vpop.f32.mrf.mxu1 }
 0x1f3   : > { %2419 = vst [vmem:[%s3231_s4 + $0x548] sm:$0xff] %v2163_v51  ;;  %2777 = vmatmul.msk.f32.gmra.mxu2 %vm440_vm0, %v358_v49  ;;  %2841 = vmatmul.msk.f32.gmra.mxu3 %vm440_vm0, %v422_v50  ;;  %v1353_v57 = vadd.f32 %v3567_v8, %v1352_v53  ;;  %v1545_v58 = vadd.f32 %v3567_v8, %v1544_v54  ;;  %v362_v50 = vld [vmem:[%s3080_s24 + $0x5f0] sm:$0xff] }
 0x1f4   : > { %2483 = vst [vmem:[%s3231_s4 + $0x748] sm:$0xff] %v2227_v52  ;;  %v426_v51 = vld [vmem:[%s3080_s24 + $0x7f0] sm:$0xff] }
 0x1f5   : > { %v2036_v59 = vmax.f32 %v1353_v57, 0.0  ;;  %v2100_v60 = vmax.f32 %v1545_v58, 0.0  ;;  %2649 = vmatmul.msk.f32.gmra.mxu0 %vm440_vm0, %v230_v55  ;;  %2713 = vmatmul.msk.f32.gmra.mxu1 %vm440_vm0, %v294_v56  ;;  %v234_v56 = vld [vmem:[%s3080_s24 + $0x1f0] sm:$0xff] }
 0x1f6   : > { %v1736_v61 = vpop.f32.mrf.mxu2  ;;  %v1928_v62 = vpop.f32.mrf.mxu3  ;;  %v298_v57 = vld [vmem:[%s3080_s24 + $0x3f0] sm:$0xff] }
 0x1f7   : > { %2292 = vst [vmem:[%s3231_s4 + $0x150] sm:$0xff] %v2036_v59  ;;  %v1737_v8 = vadd.f32 %v3914_v63, %v1736_v61  ;;  %v1929_v0 = vadd.f32 %v3914_v63, %v1928_v62 }
 0x1f8   : > { %2356 = vst [vmem:[%s3231_s4 + $0x350] sm:$0xff] %v2100_v60 }
 0x1f9   : > { %v2164_v3 = vmax.f32 %v1737_v8, 0.0  ;;  %v2228_v4 = vmax.f32 %v1929_v0, 0.0 }
 0x1fa   : > { %v1355_v5 = vpop.f32.mrf.mxu0  ;;  %v1547_v6 = vpop.f32.mrf.mxu1 }
 0x1fb   : > { %2420 = vst [vmem:[%s3231_s4 + $0x550] sm:$0xff] %v2164_v3  ;;  %2778 = vmatmul.msk.f32.gmra.mxu2 %vm440_vm0, %v359_v1  ;;  %2842 = vmatmul.msk.f32.gmra.mxu3 %vm440_vm0, %v423_v2  ;;  %v1356_v10 = vadd.f32 %v3914_v63, %v1355_v5  ;;  %v1548_v11 = vadd.f32 %v3914_v63, %v1547_v6  ;;  %v363_v2 = vld [vmem:[%s3080_s24 + $0x5f8] sm:$0xff] }
 0x1fc   : > { %2484 = vst [vmem:[%s3231_s4 + $0x750] sm:$0xff] %v2228_v4  ;;  %v427_v3 = vld [vmem:[%s3080_s24 + $0x7f8] sm:$0xff] }
 0x1fd   : > { %v2037_v12 = vmax.f32 %v1356_v10, 0.0  ;;  %v2101_v13 = vmax.f32 %v1548_v11, 0.0  ;;  %2650 = vmatmul.msk.f32.gmra.mxu0 %vm440_vm0, %v231_v7  ;;  %2714 = vmatmul.msk.f32.gmra.mxu1 %vm440_vm0, %v295_v9  ;;  %v235_v9 = vld [vmem:[%s3080_s24 + $0x1f8] sm:$0xff] }
 0x1fe   : > { %v1739_v14 = vpop.f32.mrf.mxu2  ;;  %v1931_v15 = vpop.f32.mrf.mxu3  ;;  %v299_v10 = vld [vmem:[%s3080_s24 + $0x3f8] sm:$0xff]  ;;  %s2935_s24 = sshra.s32 %s2522_s19, 4  ;;  %s2936_s24 = int_to_ptr.hbm [resolvable:$true] %s2935_s24 }
 0x1ff   : > { %2293 = vst [vmem:[%s3231_s4 + $0x158] sm:$0xff] %v2037_v12  ;;  %v1740_v16 = vadd.f32 %v3914_v63, %v1739_v14  ;;  %v1932_v17 = vadd.f32 %v3914_v63, %v1931_v15  ;;  %s2937_s25 = scalar_lea.hbm %s2936_s24, 2048  ;;  %p2942_p0 = scmp.lt.s32.totalorder %s2936_s24, %s4166_s3 }
 0x200   : > { %2357 = vst [vmem:[%s3231_s4 + $0x358] sm:$0xff] %v2101_v13  ;;  %p2938_p11 = scmp.ne.s32.totalorder %s2936_s24, %s2937_s25  ;;  %p2943_p1 = scmp.lt.s32.totalorder %s2941_s29, %s2937_s25 }
 0x201   : > { %v2165_v20 = vmax.f32 %v1740_v16, 0.0  ;;  %v2229_v21 = vmax.f32 %v1932_v17, 0.0 }
 0x202   : > { %v1358_v22 = vpop.f32.mrf.mxu0  ;;  %v1550_v23 = vpop.f32.mrf.mxu1  ;;  %p2939_p12 = pnand %p2938_p11, %p3045_p5  ;;  %p2944_p2 = por %p2943_p1, %p2942_p0 }
 0x203   : > { %2421 = vst [vmem:[%s3231_s4 + $0x558] sm:$0xff] %v2165_v20  ;;  %2779 = vmatmul.msk.f32.gmra.mxu2 %vm440_vm0, %v360_v18  ;;  %2843 = vmatmul.msk.f32.gmra.mxu3 %vm440_vm0, %v424_v19  ;;  %v1359_v26 = vadd.f32 %v3914_v63, %v1358_v22  ;;  %v1551_v27 = vadd.f32 %v3914_v63, %v1550_v23 }
 0x204   : > { %2485 = vst [vmem:[%s3231_s4 + $0x758] sm:$0xff] %v2229_v21  ;;  %p2940_p13 = pneg %p2939_p12 }
 0x205   : > { %v2038_v28 = vmax.f32 %v1359_v26, 0.0  ;;  %v2102_v29 = vmax.f32 %v1551_v27, 0.0  ;;  %2651 = vmatmul.msk.f32.gmra.mxu0 %vm440_vm0, %v232_v24  ;;  %2715 = vmatmul.msk.f32.gmra.mxu1 %vm440_vm0, %v296_v25 }
 0x206   : > { %v1742_v30 = vpop.f32.mrf.mxu2  ;;  %v1934_v31 = vpop.f32.mrf.mxu3  ;;  %p2945_p3 = pnand %p2944_p2, %p2940_p13 }
 0x207   : > { %2294 = vst [vmem:[%s3231_s4 + $0x160] sm:$0xff] %v2038_v28  ;;  %v1743_v32 = vadd.f32 %v3914_v63, %v1742_v30  ;;  %v1935_v33 = vadd.f32 %v3914_v63, %v1934_v31 }
 0x208   : > { %2358 = vst [vmem:[%s3231_s4 + $0x360] sm:$0xff] %v2102_v29 }
 0x209   : > { %v2166_v36 = vmax.f32 %v1743_v32, 0.0  ;;  %v2230_v37 = vmax.f32 %v1935_v33, 0.0 }
 0x20a   : > { %v1361_v38 = vpop.f32.mrf.mxu0  ;;  %v1553_v39 = vpop.f32.mrf.mxu1 }
 0x20b   : > { %2422 = vst [vmem:[%s3231_s4 + $0x560] sm:$0xff] %v2166_v36  ;;  %2780 = vmatmul.msk.f32.gmra.mxu2 %vm440_vm0, %v361_v34  ;;  %2844 = vmatmul.msk.f32.gmra.mxu3 %vm440_vm0, %v425_v35  ;;  %v1362_v42 = vadd.f32 %v3914_v63, %v1361_v38  ;;  %v1554_v43 = vadd.f32 %v3914_v63, %v1553_v39 }
 0x20c   : > { %2486 = vst [vmem:[%s3231_s4 + $0x760] sm:$0xff] %v2230_v37 }
 0x20d   : > { %v2039_v44 = vmax.f32 %v1362_v42, 0.0  ;;  %v2103_v45 = vmax.f32 %v1554_v43, 0.0  ;;  %2652 = vmatmul.msk.f32.gmra.mxu0 %vm440_vm0, %v233_v40  ;;  %2716 = vmatmul.msk.f32.gmra.mxu1 %vm440_vm0, %v297_v41 }
 0x20e   : > { %v1745_v46 = vpop.f32.mrf.mxu2  ;;  %v1937_v47 = vpop.f32.mrf.mxu3 }
 0x20f   : > { %2295 = vst [vmem:[%s3231_s4 + $0x168] sm:$0xff] %v2039_v44  ;;  %v1746_v48 = vadd.f32 %v3914_v63, %v1745_v46  ;;  %v1938_v49 = vadd.f32 %v3914_v63, %v1937_v47 }
 0x210   : > { %2359 = vst [vmem:[%s3231_s4 + $0x368] sm:$0xff] %v2103_v45 }
 0x211   : > { %v2167_v52 = vmax.f32 %v1746_v48, 0.0  ;;  %v2231_v53 = vmax.f32 %v1938_v49, 0.0 }
 0x212   : > { %v1364_v54 = vpop.f32.mrf.mxu0  ;;  %v1556_v55 = vpop.f32.mrf.mxu1 }
 0x213   : > { %2423 = vst [vmem:[%s3231_s4 + $0x568] sm:$0xff] %v2167_v52  ;;  %2781 = vmatmul.msk.f32.gmra.mxu2 %vm440_vm0, %v362_v50  ;;  %2845 = vmatmul.msk.f32.gmra.mxu3 %vm440_vm0, %v426_v51  ;;  %v1365_v58 = vadd.f32 %v3914_v63, %v1364_v54  ;;  %v1557_v59 = vadd.f32 %v3914_v63, %v1556_v55 }
 0x214   : > { %2487 = vst [vmem:[%s3231_s4 + $0x768] sm:$0xff] %v2231_v53 }
 0x215   : > { %v2040_v60 = vmax.f32 %v1365_v58, 0.0  ;;  %v2104_v61 = vmax.f32 %v1557_v59, 0.0  ;;  %2653 = vmatmul.msk.f32.gmra.mxu0 %vm440_vm0, %v234_v56  ;;  %2717 = vmatmul.msk.f32.gmra.mxu1 %vm440_vm0, %v298_v57 }
 0x216   : > { %v1748_v62 = vpop.f32.mrf.mxu2  ;;  %v1940_v8 = vpop.f32.mrf.mxu3 }
 0x217   : > { %2296 = vst [vmem:[%s3231_s4 + $0x170] sm:$0xff] %v2040_v60  ;;  %v1749_v0 = vadd.f32 %v3914_v63, %v1748_v62  ;;  %v1941_v1 = vadd.f32 %v3914_v63, %v1940_v8 }
 0x218   : > { %2360 = vst [vmem:[%s3231_s4 + $0x370] sm:$0xff] %v2104_v61 }
 0x219   : > { %v2168_v4 = vmax.f32 %v1749_v0, 0.0  ;;  %v2232_v5 = vmax.f32 %v1941_v1, 0.0 }
 0x21a   : > { %v1367_v6 = vpop.f32.mrf.mxu0  ;;  %v1559_v7 = vpop.f32.mrf.mxu1 }
 0x21b   : > { %2424 = vst [vmem:[%s3231_s4 + $0x570] sm:$0xff] %v2168_v4  ;;  %2782 = vmatmul.msk.f32.gmra.mxu2 %vm440_vm0, %v363_v2  ;;  %2846 = vmatmul.msk.f32.gmra.mxu3 %vm440_vm0, %v427_v3  ;;  %v1368_v11 = vadd.f32 %v3914_v63, %v1367_v6  ;;  %v1560_v12 = vadd.f32 %v3914_v63, %v1559_v7 }
 0x21c   : > { %2488 = vst [vmem:[%s3231_s4 + $0x770] sm:$0xff] %v2232_v5 }
 0x21d   : > { %v2041_v13 = vmax.f32 %v1368_v11, 0.0  ;;  %v2105_v14 = vmax.f32 %v1560_v12, 0.0  ;;  %2654 = vmatmul.msk.f32.gmra.mxu0 %vm440_vm0, %v235_v9  ;;  %2718 = vmatmul.msk.f32.gmra.mxu1 %vm440_vm0, %v299_v10 }
 0x21e   : > { %v1751_v15 = vpop.f32.mrf.mxu2  ;;  %v1943_v16 = vpop.f32.mrf.mxu3 }
 0x21f   : > { %2297 = vst [vmem:[%s3231_s4 + $0x178] sm:$0xff] %v2041_v13  ;;  %v1752_v17 = vadd.f32 %v3914_v63, %v1751_v15  ;;  %v1944_v18 = vadd.f32 %v3914_v63, %v1943_v16 }
 0x220   : > { %2361 = vst [vmem:[%s3231_s4 + $0x378] sm:$0xff] %v2105_v14 }
 0x221   : > { %v2169_v19 = vmax.f32 %v1752_v17, 0.0  ;;  %v2233_v20 = vmax.f32 %v1944_v18, 0.0 }
 0x222   : > { %v1370_v21 = vpop.f32.mrf.mxu0  ;;  %v1562_v22 = vpop.f32.mrf.mxu1 }
 0x223   : > { %2425 = vst [vmem:[%s3231_s4 + $0x578] sm:$0xff] %v2169_v19  ;;  %v1371_v23 = vadd.f32 %v3914_v63, %v1370_v21  ;;  %v1563_v24 = vadd.f32 %v3914_v63, %v1562_v22 }
 0x224   : > { %2489 = vst [vmem:[%s3231_s4 + $0x778] sm:$0xff] %v2233_v20 }
 0x225   : > { %v2042_v25 = vmax.f32 %v1371_v23, 0.0  ;;  %v2106_v26 = vmax.f32 %v1563_v24, 0.0 }
 0x226   : > { %v1754_v27 = vpop.f32.mrf.mxu2  ;;  %v1946_v28 = vpop.f32.mrf.mxu3 }
 0x227   : > { %2298 = vst [vmem:[%s3231_s4 + $0x180] sm:$0xff] %v2042_v25  ;;  %v1755_v29 = vadd.f32 %v3914_v63, %v1754_v27  ;;  %v1947_v30 = vadd.f32 %v3914_v63, %v1946_v28 }
 0x228   : > { %2362 = vst [vmem:[%s3231_s4 + $0x380] sm:$0xff] %v2106_v26 }
 0x229   : > { %v2170_v31 = vmax.f32 %v1755_v29, 0.0  ;;  %v2234_v32 = vmax.f32 %v1947_v30, 0.0 }
 0x22a   : > { %v1373_v33 = vpop.f32.mrf.mxu0  ;;  %v1565_v34 = vpop.f32.mrf.mxu1 }
 0x22b   : > { %2426 = vst [vmem:[%s3231_s4 + $0x580] sm:$0xff] %v2170_v31  ;;  %v1374_v35 = vadd.f32 %v3914_v63, %v1373_v33  ;;  %v1566_v36 = vadd.f32 %v3914_v63, %v1565_v34 }
 0x22c   : > { %2490 = vst [vmem:[%s3231_s4 + $0x780] sm:$0xff] %v2234_v32 }
 0x22d   : > { %v2043_v37 = vmax.f32 %v1374_v35, 0.0  ;;  %v2107_v38 = vmax.f32 %v1566_v36, 0.0 }
 0x22e   : > { %v1757_v39 = vpop.f32.mrf.mxu2  ;;  %v1949_v40 = vpop.f32.mrf.mxu3 }
 0x22f   : > { %2299 = vst [vmem:[%s3231_s4 + $0x188] sm:$0xff] %v2043_v37  ;;  %v1758_v41 = vadd.f32 %v3914_v63, %v1757_v39  ;;  %v1950_v42 = vadd.f32 %v3914_v63, %v1949_v40 }
 0x230   : > { %2363 = vst [vmem:[%s3231_s4 + $0x388] sm:$0xff] %v2107_v38 }
 0x231   : > { %v2171_v43 = vmax.f32 %v1758_v41, 0.0  ;;  %v2235_v44 = vmax.f32 %v1950_v42, 0.0 }
 0x232   : > { %v1376_v45 = vpop.f32.mrf.mxu0  ;;  %v1568_v46 = vpop.f32.mrf.mxu1 }
 0x233   : > { %2427 = vst [vmem:[%s3231_s4 + $0x588] sm:$0xff] %v2171_v43  ;;  %v1377_v47 = vadd.f32 %v3914_v63, %v1376_v45  ;;  %v1569_v48 = vadd.f32 %v3914_v63, %v1568_v46 }
 0x234   : > { %2491 = vst [vmem:[%s3231_s4 + $0x788] sm:$0xff] %v2235_v44 }
 0x235   : > { %v2044_v49 = vmax.f32 %v1377_v47, 0.0  ;;  %v2108_v50 = vmax.f32 %v1569_v48, 0.0 }
 0x236   : > { %v1760_v51 = vpop.f32.mrf.mxu2  ;;  %v1952_v52 = vpop.f32.mrf.mxu3 }
 0x237   : > { %2300 = vst [vmem:[%s3231_s4 + $0x190] sm:$0xff] %v2044_v49  ;;  %v1761_v53 = vadd.f32 %v3914_v63, %v1760_v51  ;;  %v1953_v54 = vadd.f32 %v3914_v63, %v1952_v52 }
 0x238   : > { %2364 = vst [vmem:[%s3231_s4 + $0x390] sm:$0xff] %v2108_v50 }
 0x239   : > { %v2172_v55 = vmax.f32 %v1761_v53, 0.0  ;;  %v2236_v56 = vmax.f32 %v1953_v54, 0.0 }
 0x23a   : > { %v1379_v57 = vpop.f32.mrf.mxu0  ;;  %v1571_v58 = vpop.f32.mrf.mxu1 }
 0x23b   : > { %2428 = vst [vmem:[%s3231_s4 + $0x590] sm:$0xff] %v2172_v55  ;;  %v1380_v59 = vadd.f32 %v3914_v63, %v1379_v57  ;;  %v1572_v60 = vadd.f32 %v3914_v63, %v1571_v58 }
 0x23c   : > { %2492 = vst [vmem:[%s3231_s4 + $0x790] sm:$0xff] %v2236_v56 }
 0x23d   : > { %v2045_v61 = vmax.f32 %v1380_v59, 0.0  ;;  %v2109_v62 = vmax.f32 %v1572_v60, 0.0 }
 0x23e   : > { %v1763_v8 = vpop.f32.mrf.mxu2  ;;  %v1955_v0 = vpop.f32.mrf.mxu3 }
 0x23f   : > { %2301 = vst [vmem:[%s3231_s4 + $0x198] sm:$0xff] %v2045_v61  ;;  %v1764_v1 = vadd.f32 %v3914_v63, %v1763_v8  ;;  %v1956_v2 = vadd.f32 %v3914_v63, %v1955_v0 }
 0x240   : > { %2365 = vst [vmem:[%s3231_s4 + $0x398] sm:$0xff] %v2109_v62 }
 0x241   : > { %v2173_v3 = vmax.f32 %v1764_v1, 0.0  ;;  %v2237_v4 = vmax.f32 %v1956_v2, 0.0 }
 0x242   : > { %v1382_v5 = vpop.f32.mrf.mxu0  ;;  %v1574_v6 = vpop.f32.mrf.mxu1 }
 0x243   : > { %2429 = vst [vmem:[%s3231_s4 + $0x598] sm:$0xff] %v2173_v3  ;;  %v1383_v7 = vadd.f32 %v3914_v63, %v1382_v5  ;;  %v1575_v9 = vadd.f32 %v3914_v63, %v1574_v6 }
 0x244   : > { %2493 = vst [vmem:[%s3231_s4 + $0x798] sm:$0xff] %v2237_v4 }
 0x245   : > { %v2046_v10 = vmax.f32 %v1383_v7, 0.0  ;;  %v2110_v11 = vmax.f32 %v1575_v9, 0.0 }
 0x246   : > { %v1766_v12 = vpop.f32.mrf.mxu2  ;;  %v1958_v13 = vpop.f32.mrf.mxu3 }
 0x247   : > { %2302 = vst [vmem:[%s3231_s4 + $0x1a0] sm:$0xff] %v2046_v10  ;;  %v1767_v14 = vadd.f32 %v3914_v63, %v1766_v12  ;;  %v1959_v15 = vadd.f32 %v3914_v63, %v1958_v13 }
 0x248   : > { %2366 = vst [vmem:[%s3231_s4 + $0x3a0] sm:$0xff] %v2110_v11 }
 0x249   : > { %v2174_v16 = vmax.f32 %v1767_v14, 0.0  ;;  %v2238_v17 = vmax.f32 %v1959_v15, 0.0 }
 0x24a   : > { %v1385_v18 = vpop.f32.mrf.mxu0  ;;  %v1577_v19 = vpop.f32.mrf.mxu1 }
 0x24b   : > { %2430 = vst [vmem:[%s3231_s4 + $0x5a0] sm:$0xff] %v2174_v16  ;;  %v1386_v20 = vadd.f32 %v3914_v63, %v1385_v18  ;;  %v1578_v21 = vadd.f32 %v3914_v63, %v1577_v19 }
 0x24c   : > { %2494 = vst [vmem:[%s3231_s4 + $0x7a0] sm:$0xff] %v2238_v17 }
 0x24d   : > { %v2047_v22 = vmax.f32 %v1386_v20, 0.0  ;;  %v2111_v23 = vmax.f32 %v1578_v21, 0.0 }
 0x24e   : > { %v1769_v24 = vpop.f32.mrf.mxu2  ;;  %v1961_v25 = vpop.f32.mrf.mxu3 }
 0x24f   : > { %2303 = vst [vmem:[%s3231_s4 + $0x1a8] sm:$0xff] %v2047_v22  ;;  %v1770_v26 = vadd.f32 %v3914_v63, %v1769_v24  ;;  %v1962_v27 = vadd.f32 %v3914_v63, %v1961_v25 }
 0x250   : > { %2367 = vst [vmem:[%s3231_s4 + $0x3a8] sm:$0xff] %v2111_v23 }
 0x251   : > { %v2175_v28 = vmax.f32 %v1770_v26, 0.0  ;;  %v2239_v29 = vmax.f32 %v1962_v27, 0.0 }
 0x252   : > { %v1388_v30 = vpop.f32.mrf.mxu0  ;;  %v1580_v31 = vpop.f32.mrf.mxu1 }
 0x253   : > { %2431 = vst [vmem:[%s3231_s4 + $0x5a8] sm:$0xff] %v2175_v28  ;;  %v1389_v32 = vadd.f32 %v3914_v63, %v1388_v30  ;;  %v1581_v33 = vadd.f32 %v3914_v63, %v1580_v31 }
 0x254   : > { %2495 = vst [vmem:[%s3231_s4 + $0x7a8] sm:$0xff] %v2239_v29 }
 0x255   : > { %v2048_v34 = vmax.f32 %v1389_v32, 0.0  ;;  %v2112_v35 = vmax.f32 %v1581_v33, 0.0 }
 0x256   : > { %v1772_v36 = vpop.f32.mrf.mxu2  ;;  %v1964_v37 = vpop.f32.mrf.mxu3 }
 0x257   : > { %2304 = vst [vmem:[%s3231_s4 + $0x1b0] sm:$0xff] %v2048_v34  ;;  %v1773_v38 = vadd.f32 %v3914_v63, %v1772_v36  ;;  %v1965_v39 = vadd.f32 %v3914_v63, %v1964_v37 }
 0x258   : > { %2368 = vst [vmem:[%s3231_s4 + $0x3b0] sm:$0xff] %v2112_v35 }
 0x259   : > { %v2176_v40 = vmax.f32 %v1773_v38, 0.0  ;;  %v2240_v41 = vmax.f32 %v1965_v39, 0.0 }
 0x25a   : > { %v1391_v42 = vpop.f32.mrf.mxu0  ;;  %v1583_v43 = vpop.f32.mrf.mxu1 }
 0x25b   : > { %2432 = vst [vmem:[%s3231_s4 + $0x5b0] sm:$0xff] %v2176_v40  ;;  %v1392_v44 = vadd.f32 %v3914_v63, %v1391_v42  ;;  %v1584_v45 = vadd.f32 %v3914_v63, %v1583_v43 }
 0x25c   : > { %2496 = vst [vmem:[%s3231_s4 + $0x7b0] sm:$0xff] %v2240_v41 }
 0x25d   : > { %v2049_v46 = vmax.f32 %v1392_v44, 0.0  ;;  %v2113_v47 = vmax.f32 %v1584_v45, 0.0 }
 0x25e   : > { %v1775_v48 = vpop.f32.mrf.mxu2  ;;  %v1967_v49 = vpop.f32.mrf.mxu3 }
 0x25f   : > { %2305 = vst [vmem:[%s3231_s4 + $0x1b8] sm:$0xff] %v2049_v46  ;;  %v1776_v50 = vadd.f32 %v3914_v63, %v1775_v48  ;;  %v1968_v51 = vadd.f32 %v3914_v63, %v1967_v49 }
 0x260   : > { %2369 = vst [vmem:[%s3231_s4 + $0x3b8] sm:$0xff] %v2113_v47 }
 0x261   : > { %v2177_v52 = vmax.f32 %v1776_v50, 0.0  ;;  %v2241_v53 = vmax.f32 %v1968_v51, 0.0 }
 0x262   : > { %v1394_v54 = vpop.f32.mrf.mxu0  ;;  %v1586_v55 = vpop.f32.mrf.mxu1 }
 0x263   : > { %2433 = vst [vmem:[%s3231_s4 + $0x5b8] sm:$0xff] %v2177_v52  ;;  %v1395_v56 = vadd.f32 %v3914_v63, %v1394_v54  ;;  %v1587_v57 = vadd.f32 %v3914_v63, %v1586_v55 }
 0x264   : > { %2497 = vst [vmem:[%s3231_s4 + $0x7b8] sm:$0xff] %v2241_v53 }
 0x265   : > { %v2050_v58 = vmax.f32 %v1395_v56, 0.0  ;;  %v2114_v59 = vmax.f32 %v1587_v57, 0.0 }
 0x266   : > { %v1778_v60 = vpop.f32.mrf.mxu2  ;;  %v1970_v61 = vpop.f32.mrf.mxu3 }
 0x267   : > { %2306 = vst [vmem:[%s3231_s4 + $0x1c0] sm:$0xff] %v2050_v58  ;;  %v1779_v62 = vadd.f32 %v3914_v63, %v1778_v60  ;;  %v1971_v8 = vadd.f32 %v3914_v63, %v1970_v61 }
 0x268   : > { %2370 = vst [vmem:[%s3231_s4 + $0x3c0] sm:$0xff] %v2114_v59 }
 0x269   : > { %v2178_v0 = vmax.f32 %v1779_v62, 0.0  ;;  %v2242_v1 = vmax.f32 %v1971_v8, 0.0 }
 0x26a   : > { %v1397_v2 = vpop.f32.mrf.mxu0  ;;  %v1589_v3 = vpop.f32.mrf.mxu1 }
 0x26b   : > { %2434 = vst [vmem:[%s3231_s4 + $0x5c0] sm:$0xff] %v2178_v0  ;;  %v1398_v4 = vadd.f32 %v3914_v63, %v1397_v2  ;;  %v1590_v5 = vadd.f32 %v3914_v63, %v1589_v3 }
 0x26c   : > { %2498 = vst [vmem:[%s3231_s4 + $0x7c0] sm:$0xff] %v2242_v1 }
 0x26d   : > { %v2051_v6 = vmax.f32 %v1398_v4, 0.0  ;;  %v2115_v7 = vmax.f32 %v1590_v5, 0.0 }
 0x26e   : > { %v1781_v9 = vpop.f32.mrf.mxu2  ;;  %v1973_v10 = vpop.f32.mrf.mxu3 }
 0x26f   : > { %2307 = vst [vmem:[%s3231_s4 + $0x1c8] sm:$0xff] %v2051_v6  ;;  %v1782_v11 = vadd.f32 %v3914_v63, %v1781_v9  ;;  %v1974_v12 = vadd.f32 %v3914_v63, %v1973_v10 }
 0x270   : > { %2371 = vst [vmem:[%s3231_s4 + $0x3c8] sm:$0xff] %v2115_v7 }
 0x271   : > { %v2179_v13 = vmax.f32 %v1782_v11, 0.0  ;;  %v2243_v14 = vmax.f32 %v1974_v12, 0.0 }
 0x272   : > { %v1400_v15 = vpop.f32.mrf.mxu0  ;;  %v1592_v16 = vpop.f32.mrf.mxu1 }
 0x273   : > { %2435 = vst [vmem:[%s3231_s4 + $0x5c8] sm:$0xff] %v2179_v13  ;;  %v1401_v17 = vadd.f32 %v3914_v63, %v1400_v15  ;;  %v1593_v18 = vadd.f32 %v3914_v63, %v1592_v16 }
 0x274   : > { %2499 = vst [vmem:[%s3231_s4 + $0x7c8] sm:$0xff] %v2243_v14 }
 0x275   : > { %v2052_v19 = vmax.f32 %v1401_v17, 0.0  ;;  %v2116_v20 = vmax.f32 %v1593_v18, 0.0 }
 0x276   : > { %v1784_v21 = vpop.f32.mrf.mxu2  ;;  %v1976_v22 = vpop.f32.mrf.mxu3 }
 0x277   : > { %2308 = vst [vmem:[%s3231_s4 + $0x1d0] sm:$0xff] %v2052_v19  ;;  %v1785_v23 = vadd.f32 %v3914_v63, %v1784_v21  ;;  %v1977_v24 = vadd.f32 %v3914_v63, %v1976_v22 }
 0x278   : > { %2372 = vst [vmem:[%s3231_s4 + $0x3d0] sm:$0xff] %v2116_v20 }
 0x279   : > { %v2180_v25 = vmax.f32 %v1785_v23, 0.0  ;;  %v2244_v26 = vmax.f32 %v1977_v24, 0.0 }
 0x27a   : > { %v1403_v27 = vpop.f32.mrf.mxu0  ;;  %v1595_v28 = vpop.f32.mrf.mxu1 }
 0x27b   : > { %2436 = vst [vmem:[%s3231_s4 + $0x5d0] sm:$0xff] %v2180_v25  ;;  %v1404_v29 = vadd.f32 %v3914_v63, %v1403_v27  ;;  %v1596_v30 = vadd.f32 %v3914_v63, %v1595_v28 }
 0x27c   : > { %2500 = vst [vmem:[%s3231_s4 + $0x7d0] sm:$0xff] %v2244_v26 }
 0x27d   : > { %v2053_v31 = vmax.f32 %v1404_v29, 0.0  ;;  %v2117_v32 = vmax.f32 %v1596_v30, 0.0 }
 0x27e   : > { %v1787_v33 = vpop.f32.mrf.mxu2  ;;  %v1979_v34 = vpop.f32.mrf.mxu3 }
 0x27f   : > { %2309 = vst [vmem:[%s3231_s4 + $0x1d8] sm:$0xff] %v2053_v31  ;;  %v1788_v35 = vadd.f32 %v3914_v63, %v1787_v33  ;;  %v1980_v36 = vadd.f32 %v3914_v63, %v1979_v34 }
 0x280   : > { %2373 = vst [vmem:[%s3231_s4 + $0x3d8] sm:$0xff] %v2117_v32 }
 0x281   : > { %v2181_v37 = vmax.f32 %v1788_v35, 0.0  ;;  %v2245_v38 = vmax.f32 %v1980_v36, 0.0 }
 0x282   : > { %v1406_v39 = vpop.f32.mrf.mxu0  ;;  %v1598_v40 = vpop.f32.mrf.mxu1 }
 0x283   : > { %2437 = vst [vmem:[%s3231_s4 + $0x5d8] sm:$0xff] %v2181_v37  ;;  %v1407_v41 = vadd.f32 %v3914_v63, %v1406_v39  ;;  %v1599_v42 = vadd.f32 %v3914_v63, %v1598_v40 }
 0x284   : > { %2501 = vst [vmem:[%s3231_s4 + $0x7d8] sm:$0xff] %v2245_v38 }
 0x285   : > { %v2054_v43 = vmax.f32 %v1407_v41, 0.0  ;;  %v2118_v44 = vmax.f32 %v1599_v42, 0.0 }
 0x286   : > { %v1790_v45 = vpop.f32.mrf.mxu2  ;;  %v1982_v46 = vpop.f32.mrf.mxu3 }
 0x287   : > { %2310 = vst [vmem:[%s3231_s4 + $0x1e0] sm:$0xff] %v2054_v43  ;;  %v1791_v47 = vadd.f32 %v3914_v63, %v1790_v45  ;;  %v1983_v48 = vadd.f32 %v3914_v63, %v1982_v46 }
 0x288   : > { %2374 = vst [vmem:[%s3231_s4 + $0x3e0] sm:$0xff] %v2118_v44 }
 0x289   : > { %v2182_v49 = vmax.f32 %v1791_v47, 0.0  ;;  %v2246_v50 = vmax.f32 %v1983_v48, 0.0 }
 0x28a   : > { %v1409_v51 = vpop.f32.mrf.mxu0  ;;  %v1601_v52 = vpop.f32.mrf.mxu1 }
 0x28b   : > { %2438 = vst [vmem:[%s3231_s4 + $0x5e0] sm:$0xff] %v2182_v49  ;;  %v1410_v53 = vadd.f32 %v3914_v63, %v1409_v51  ;;  %v1602_v54 = vadd.f32 %v3914_v63, %v1601_v52 }
 0x28c   : > { %2502 = vst [vmem:[%s3231_s4 + $0x7e0] sm:$0xff] %v2246_v50 }
 0x28d   : > { %v2055_v55 = vmax.f32 %v1410_v53, 0.0  ;;  %v2119_v56 = vmax.f32 %v1602_v54, 0.0 }
 0x28e   : > { %v1793_v57 = vpop.f32.mrf.mxu2  ;;  %v1985_v58 = vpop.f32.mrf.mxu3 }
 0x28f   : > { %2311 = vst [vmem:[%s3231_s4 + $0x1e8] sm:$0xff] %v2055_v55  ;;  %v1794_v59 = vadd.f32 %v3914_v63, %v1793_v57  ;;  %v1986_v60 = vadd.f32 %v3914_v63, %v1985_v58 }
 0x290   : > { %2375 = vst [vmem:[%s3231_s4 + $0x3e8] sm:$0xff] %v2119_v56 }
 0x291   : > { %v2183_v61 = vmax.f32 %v1794_v59, 0.0  ;;  %v2247_v62 = vmax.f32 %v1986_v60, 0.0 }
 0x292   : > { %v1412_v8 = vpop.f32.mrf.mxu0  ;;  %v1604_v0 = vpop.f32.mrf.mxu1 }
 0x293   : > { %2439 = vst [vmem:[%s3231_s4 + $0x5e8] sm:$0xff] %v2183_v61  ;;  %v1413_v1 = vadd.f32 %v3914_v63, %v1412_v8  ;;  %v1605_v2 = vadd.f32 %v3914_v63, %v1604_v0 }
 0x294   : > { %2503 = vst [vmem:[%s3231_s4 + $0x7e8] sm:$0xff] %v2247_v62 }
 0x295   : > { %v2056_v3 = vmax.f32 %v1413_v1, 0.0  ;;  %v2120_v4 = vmax.f32 %v1605_v2, 0.0 }
 0x296   : > { %v1796_v5 = vpop.f32.mrf.mxu2  ;;  %v1988_v6 = vpop.f32.mrf.mxu3 }
 0x297   : > { %2312 = vst [vmem:[%s3231_s4 + $0x1f0] sm:$0xff] %v2056_v3  ;;  %v1797_v7 = vadd.f32 %v3914_v63, %v1796_v5  ;;  %v1989_v9 = vadd.f32 %v3914_v63, %v1988_v6 }
 0x298   : > { %2376 = vst [vmem:[%s3231_s4 + $0x3f0] sm:$0xff] %v2120_v4 }
 0x299   : > { %v2184_v10 = vmax.f32 %v1797_v7, 0.0  ;;  %v2248_v11 = vmax.f32 %v1989_v9, 0.0 }
 0x29a   : > { %v1415_v12 = vpop.f32.mrf.mxu0  ;;  %v1607_v13 = vpop.f32.mrf.mxu1 }
 0x29b   : > { %2440 = vst [vmem:[%s3231_s4 + $0x5f0] sm:$0xff] %v2184_v10  ;;  %v1416_v14 = vadd.f32 %v3914_v63, %v1415_v12  ;;  %v1608_v15 = vadd.f32 %v3914_v63, %v1607_v13 }
 0x29c   : > { %2504 = vst [vmem:[%s3231_s4 + $0x7f0] sm:$0xff] %v2248_v11 }
 0x29d   : > { %v2057_v16 = vmax.f32 %v1416_v14, 0.0  ;;  %v2121_v17 = vmax.f32 %v1608_v15, 0.0 }
 0x29e   : > { %v1799_v18 = vpop.f32.mrf.mxu2  ;;  %v1991_v19 = vpop.f32.mrf.mxu3 }
 0x29f   : > { %2313 = vst [vmem:[%s3231_s4 + $0x1f8] sm:$0xff] %v2057_v16  ;;  %v1800_v20 = vadd.f32 %v3914_v63, %v1799_v18  ;;  %v1992_v21 = vadd.f32 %v3914_v63, %v1991_v19 }
 0x2a0   : > { %2377 = vst [vmem:[%s3231_s4 + $0x3f8] sm:$0xff] %v2121_v17 }
 0x2a1   : > { %v2185_v22 = vmax.f32 %v1800_v20, 0.0  ;;  %v2249_v23 = vmax.f32 %v1992_v21, 0.0 }
 0x2a3   : > { %2441 = vst [vmem:[%s3231_s4 + $0x5f8] sm:$0xff] %v2185_v22 }
 0x2a4   : > { %2505 = vst [vmem:[%s3231_s4 + $0x7f8] sm:$0xff] %v2249_v23 }
 0x2a5   : > { %2948 = shalt.err (!%p2945_p3)
}
 0x2a6   : > { %s2985_s27 = smov 128   ;;  %s2986_s4 = smov 8  }
 0x2a7   : > { %2877 = dma.vmem_to_hbm [thread:$0]  (%p3045_p5), %s2520_s16, 32768, %s2522_s19, %s2507_s20, %s2985_s27, %s2985_s27, %s2986_s4  }
 0x2a8 PF: > { %p2883_p4 = scmp.ge.s32.totalorder %s2983_s15, 2  ;;  %s2536_s6 = sand.u32 1, %s2971_s12  }
 0x2a9   : > { %s2537_s7 = scalar_lea.sflag [#allocation3], %s2536_s6 }
 0x2aa   : > { %p2880_p7 = pnand %p2883_p4, %p3049_p6 }
 0x2ac   : > { %p2881_p8 = pneg %p2880_p7 }
 0x2ae   : > { %2966 = dma.done.wait (%p2881_p8), %s2537_s7, 32768  }
 0x2af   : > { %2968 = vsyncadd (%p2881_p8), %s2537_s7, 4294934528  ;;  %p13_p9 = scmp.ge.s32.totalorder %s3032_s18, 22   ;;  %s4169_s12 = smov %s2975_s13 }
 0x2b0   : > { %s4170_s13 = smov %s2979_s14  ;;  %s4171_s14 = smov %s3043_s21 }
 0x2b1   : > { %s4172_s15 = smov %s3032_s18  ;;  %15 = sbr.rel (!%p13_p9) target bundleno = 3 (0x3), region = 67 }
 0x2b6   :  { %2543 = vsyncpa [#allocation3], 1 }
 0x2b7   :  { %2545 = vsyncpa [#allocation3 + $0x1], 1 }

</bundles_post_ra>
